<compile_context>
chip_gen: v6e
topology: v6e:2x2x1
jax: 0.10.0
libtpu: 0.0.40
codegen_flags: <defaults>
</compile_context>

<pallas_src>
import math
from functools import partial

import jax
import jax.numpy as jnp
from jax.experimental import pallas as pl
from jax.experimental.pallas import tpu as pltpu

# torch.finfo(torch.float32).eps  (nn.RMSNorm default eps when eps=None)
_RMS_EPS = 1.1920928955078125e-07


def _rmsnorm(x, g):
    # x: (T, E) fp32, g: (1, E)
    ms = jnp.mean(x * x, axis=-1, keepdims=True)
    return x * jax.lax.rsqrt(ms + _RMS_EPS) * g


def _gelu_exact(x):
    # torch.nn.GELU() default == exact erf formulation (erf goes to the EUP)
    return 0.5 * x * (1.0 + jax.lax.erf(x * (1.0 / math.sqrt(2.0))))


def encoder_block_kernel(x_ref, g1_ref, g2_ref,
                         wqkv_ref, wo_ref, bo_ref,
                         w1_ref, b1_ref, w2_ref, b2_ref,
                         out_ref,
                         k_sc, v_sc, m_sc, l_sc, acc_sc,
                         *, n_head, approx_recip):
    qi = pl.program_id(1)
    S, E = x_ref.shape[1], x_ref.shape[2]
    Tq = out_ref.shape[1]
    H = n_head
    hs = E // H
    n_q_tiles = S // Tq
    nk, tk = k_sc.shape[0], k_sc.shape[2]          # KV-tile count / size (static)

    cd = wqkv_ref.dtype                            # MXU compute dtype (bf16 by default)
    g1 = g1_ref[...]

    def write_kv(k2d, v2d):
        # (S, E) fp32 -> (nk, H, tk, hs) compute-dtype scratch; one relayout per batch element.
        k_sc[...] = k2d.reshape(nk, tk, H, hs).transpose(0, 2, 1, 3).astype(cd)
        v_sc[...] = v2d.reshape(nk, tk, H, hs).transpose(0, 2, 1, 3).astype(cd)

    if n_q_tiles == 1:
        # Whole sequence in one query tile: single fused (E, 3E) projection.
        x_t = x_ref[0].astype(jnp.float32)                       # (S, E)
        xn = _rmsnorm(x_t, g1)
        qkv = jnp.dot(xn.astype(cd), wqkv_ref[...],
                      preferred_element_type=jnp.float32)        # (S, 3E)
        q = qkv[:, :E]
        write_kv(qkv[:, E:2 * E], qkv[:, 2 * E:])
    else:
        # K/V are projected ONCE per batch element and cached in VMEM scratch.
        @pl.when(qi == 0)
        def _():
            xn_full = _rmsnorm(x_ref[0].astype(jnp.float32), g1)
            kv = jnp.dot(xn_full.astype(cd), wqkv_ref[:, E:],
                         preferred_element_type=jnp.float32)     # (S, 2E)
            write_kv(kv[:, :E], kv[:, E:])

        q_start = pl.multiple_of(qi * Tq, Tq)
        x_t = x_ref[0, pl.ds(q_start, Tq), :].astype(jnp.float32)  # (Tq, E) residual
        xn_t = _rmsnorm(x_t, g1)
        q = jnp.dot(xn_t.astype(cd), wqkv_ref[:, :E],
                    preferred_element_type=jnp.float32)            # (Tq, E)

    # hs**-0.5 is already folded into the Q weight columns on the host.
    qh = q.reshape(Tq, H, hs).transpose(1, 0, 2).astype(cd)        # (H, Tq, hs)

    # Flash-style online softmax over KV tiles (VMEM bounded by (H, Tq, tk)).
    m_sc[...] = jnp.full(m_sc.shape, -jnp.inf, m_sc.dtype)
    l_sc[...] = jnp.zeros(l_sc.shape, l_sc.dtype)
    acc_sc[...] = jnp.zeros(acc_sc.shape, acc_sc.dtype)

    @pl.loop(0, nk)
    def _(i):
        k_t = k_sc[i]                                              # (H, tk, hs)
        v_t = v_sc[i]
        s = jnp.einsum("htd,hsd->hts", qh, k_t,
                       preferred_element_type=jnp.float32)         # (H, Tq, tk) fp32
        m_prev = m_sc[...]
        m_new = jnp.maximum(m_prev, jnp.max(s, axis=-1, keepdims=True))
        alpha = jnp.exp(m_prev - m_new)
        p = jnp.exp(s - m_new)                                     # un-normalized
        l_sc[...] = alpha * l_sc[...] + jnp.sum(p, axis=-1, keepdims=True)
        acc_sc[...] = alpha * acc_sc[...] + jnp.einsum(
            "hts,hsd->htd", p.astype(cd), v_t,
            preferred_element_type=jnp.float32)                    # (H, Tq, hs)
        m_sc[...] = m_new

    # Normalize AFTER the PV matmul; reciprocal goes to the (otherwise idle) EUP slot.
    inv_l = pl.reciprocal(l_sc[...], approx=approx_recip)          # (H, Tq, 1)
    o = (acc_sc[...] * inv_l).transpose(1, 0, 2).reshape(Tq, E)    # (Tq, E) fp32

    sa = jnp.dot(o.astype(cd), wo_ref[...],
                 preferred_element_type=jnp.float32) + bo_ref[...]
    x1 = x_t + sa                                                  # residual 1

    xn2 = _rmsnorm(x1, g2_ref[...])
    h = jnp.dot(xn2.astype(cd), w1_ref[...],
                preferred_element_type=jnp.float32) + b1_ref[...]
    h = _gelu_exact(h)
    ff = jnp.dot(h.astype(cd), w2_ref[...],
                 preferred_element_type=jnp.float32) + b2_ref[...]
    out_ref[0] = (x1 + ff).astype(out_ref.dtype)                   # residual 2


def _choose_tile(total, want):
    """Largest divisor of `total` that is <= `want` (so tiling never silently disables)."""
    want = min(want, total)
    for t in range(want, 0, -1):
        if total % t == 0:
            return t
    return total


def _vmem_limit_bytes(B, T, E, F, n_head, tq, tk, weight_dtype, x_dtype):
    wb = jnp.dtype(weight_dtype).itemsize
    xb = jnp.dtype(x_dtype).itemsize
    hs = E // n_head
    pad_hs = -(-hs // 128) * 128
    est = 0
    est += (3 * E * E + E * E + 2 * E * F) * wb          # single-buffered matmul weights
    est += 2 * T * E * xb                                # double-buffered x block
    est += 2 * tq * E * xb                               # double-buffered output block
    est += 2 * n_head * T * pad_hs * wb                  # K/V scratch (lane-padded)
    est += n_head * tq * (pad_hs + 2 * 128) * 4          # flash accumulators (fp32)
    est += 2 * n_head * tq * tk * 4                      # score / exp tiles (fp32)
    est += 2 * T * 2 * E * 4                             # qi==0 KV-projection intermediates
    est += 4 * tq * F * 4                                # FFN intermediates
    limit = int(est * 1.4) + (8 << 20)
    limit = max(limit, 32 << 20)
    cap = 64 << 20                                       # v7x-safe floor if query fails
    try:
        cap = int(pltpu.get_tpu_info().vmem_capacity_bytes * 0.9)
    except Exception:
        pass
    return min(limit, cap)


def encoder_block(x, params, n_head, *, q_tile=256, kv_tile=512,
                  weight_dtype=jnp.bfloat16, approx_recip=True):
    """x: (B, T, E). Returns (B, T, E).

    q_tile / kv_tile: 128-256 / 256-512 recommended on v6e; keep the working set VMEM-checked
    (smaller tiles) on v7x (64 MiB physical). Under jit, the weight fusion/cast below is
    constant-folded and happens once, not per call.
    """
    B, T, E = x.shape
    F = params["w1"].shape[1]
    hs = E // n_head

    tq = _choose_tile(T, q_tile)
    tk = _choose_tile(T, kv_tile)
    n_q_tiles = T // tq
    n_kv_tiles = T // tk

    # Fused Q|K|V weight, (E, 3E), attention scale folded into the Q columns.
    scale = hs ** (-0.5)
    wqkv = jnp.concatenate(
        [params["wq"] * scale, params["wk"], params["wv"]], axis=1).astype(weight_dtype)
    wo = params["wo"].astype(weight_dtype)
    w1 = params["w1"].astype(weight_dtype)
    w2 = params["w2"].astype(weight_dtype)

    def wspec(shape):
        # Constant index map -> single-buffered (double-buffering would only waste VMEM).
        return pl.BlockSpec(shape, lambda b, qi: (0, 0), pipeline_mode=pl.Buffered(1))

    in_specs = [
        pl.BlockSpec((1, T, E), lambda b, qi: (b, 0, 0)),            # full sequence per batch elem
        wspec((1, E)), wspec((1, E)),                                # g1, g2
        wspec((E, 3 * E)), wspec((E, E)), wspec((1, E)),             # wqkv, wo, bo
        wspec((E, F)), wspec((1, F)), wspec((F, E)), wspec((1, E)),  # w1, b1, w2, b2
    ]

    scratch_shapes = [
        pltpu.VMEM((n_kv_tiles, n_head, tk, hs), weight_dtype),      # K cache
        pltpu.VMEM((n_kv_tiles, n_head, tk, hs), weight_dtype),      # V cache
        pltpu.VMEM((n_head, tq, 1), jnp.float32),                    # m (running max)
        pltpu.VMEM((n_head, tq, 1), jnp.float32),                    # l (running denom)
        pltpu.VMEM((n_head, tq, hs), jnp.float32),                   # acc (un-normalized PV)
    ]

    flops = (2 * B * T * E * 3 * E          # QKV projection
             + 4 * B * T * T * E            # QK^T + PV
             + 2 * B * T * E * E            # output projection
             + 4 * B * T * E * F)           # FFN
    transcendentals = B * n_head * T * T + B * T * F
    wbytes = jnp.dtype(weight_dtype).itemsize
    bytes_accessed = (2 * x.size * x.dtype.itemsize
                      + (wqkv.size + wo.size + w1.size + w2.size) * wbytes)

    return pl.pallas_call(
        partial(encoder_block_kernel, n_head=n_head, approx_recip=approx_recip),
        out_shape=jax.ShapeDtypeStruct((B, T, E), x.dtype),
        grid=(B, n_q_tiles),
        in_specs=in_specs,
        out_specs=pl.BlockSpec((1, tq, E), lambda b, qi: (b, qi, 0)),
        scratch_shapes=scratch_shapes,
        compiler_params=pltpu.CompilerParams(
            # B stays "parallel" (megacore on v7x); the query-tile axis must be "arbitrary"
            # so the K/V scratch carried across it is valid.
            dimension_semantics=("parallel", "arbitrary"),
            vmem_limit_bytes=_vmem_limit_bytes(B, T, E, F, n_head, tq, tk,
                                               weight_dtype, x.dtype)),
        cost_estimate=pl.CostEstimate(flops=flops,
                                      transcendentals=transcendentals,
                                      bytes_accessed=bytes_accessed),
    )(x,
      params["g1"], params["g2"],
      wqkv, wo, params["bo"],
      w1, params["b1"], w2, params["b2"])


# ---------------- pure-JAX reference (mirrors the PyTorch EncoderBlock forward) ----------------
def _ref_forward(x, p, n_head):
    B, T, E = x.shape
    hs = E // n_head

    def rms(v, g):
        return v * jax.lax.rsqrt(jnp.mean(v * v, -1, keepdims=True) + _RMS_EPS) * g

    xn = rms(x, p["g1"])
    q = xn @ p["wq"]
    k = xn @ p["wk"]
    v = xn @ p["wv"]
    q = q.reshape(B, T, n_head, hs).transpose(0, 2, 1, 3)
    k = k.reshape(B, T, n_head, hs).transpose(0, 2, 1, 3)
    v = v.reshape(B, T, n_head, hs).transpose(0, 2, 1, 3)
    wei = jnp.einsum("bhtd,bhsd->bhts", q, k) * hs ** (-0.5)
    wei = jax.nn.softmax(wei, axis=-1)
    o = jnp.einsum("bhts,bhsd->bhtd", wei, v)
    o = o.transpose(0, 2, 1, 3).reshape(B, T, E)
    x1 = x + (o @ p["wo"] + p["bo"])

    xn2 = rms(x1, p["g2"])
    h = xn2 @ p["w1"] + p["b1"]
    h = 0.5 * h * (1.0 + jax.lax.erf(h / math.sqrt(2.0)))
    return x1 + (h @ p["w2"] + p["b2"])


if __name__ == "__main__":
    B, T = 2, 8
    n_embd, n_head = 32, 4
    ffwd_size = 2 * n_embd

    key = jax.random.PRNGKey(0)
    keys = jax.random.split(key, 12)

    def w(k, shape, scale=0.1):
        return (scale * jax.random.normal(k, shape)).astype(jnp.float32)

    params = {
        "g1": jnp.ones((1, n_embd), jnp.float32),
        "g2": jnp.ones((1, n_embd), jnp.float32),
        "wq": w(keys[0], (n_embd, n_embd)),
        "wk": w(keys[1], (n_embd, n_embd)),
        "wv": w(keys[2], (n_embd, n_embd)),
        "wo": w(keys[3], (n_embd, n_embd)),
        "bo": w(keys[4], (1, n_embd)),
        "w1": w(keys[5], (n_embd, ffwd_size)),
        "b1": w(keys[6], (1, ffwd_size)),
        "w2": w(keys[7], (ffwd_size, n_embd)),
        "b2": w(keys[8], (1, n_embd)),
    }

    x = jax.random.normal(keys[9], (B, T, n_embd), jnp.float32)
    ref = _ref_forward(x, params, n_head)

    # 1) fp32 weights + exact reciprocal, single query/KV tile (fused (E,3E) QKV path).
    out = jax.block_until_ready(
        encoder_block(x, params, n_head, weight_dtype=jnp.float32, approx_recip=False))
    assert out.shape == (B, T, n_embd)
    err = float(jnp.max(jnp.abs(out - ref)))
    assert err < 1e-3, err

    # 2) tiled path: 2 query tiles x 2 KV tiles -> exercises the once-per-batch KV cache
    #    (pl.when on the 'arbitrary' axis) and the multi-step online-softmax loop.
    T2 = 256
    x2 = jax.random.normal(keys[10], (B, T2, n_embd), jnp.float32)
    ref2 = _ref_forward(x2, params, n_head)
    out2 = jax.block_until_ready(
        encoder_block(x2, params, n_head, q_tile=128, kv_tile=128,
                      weight_dtype=jnp.float32, approx_recip=False))
    err2 = float(jnp.max(jnp.abs(out2 - ref2)))
    assert err2 < 1e-3, err2

    # 3) default perf config: bf16 MXU weights/activations, fp32 accumulation, approx reciprocal.
    out3 = jax.block_until_ready(
        encoder_block(x2, params, n_head, q_tile=128, kv_tile=128))
    err3 = float(jnp.max(jnp.abs(out3 - ref2)))
    assert err3 < 1.5e-1, err3

    print("KERNEL_OK")
</pallas_src>

<mosaic_0001>
module attributes {stable_mosaic.version = 11 : i64} {
  func.func @encoder_block_kernel(%arg0: i32, %arg1: i32, %arg2: memref<1x8x32xf32, #tpu.memory_space<vmem>>, %arg3: memref<1x32xf32, #tpu.memory_space<vmem>>, %arg4: memref<1x32xf32, #tpu.memory_space<vmem>>, %arg5: memref<32x96xf32, #tpu.memory_space<vmem>>, %arg6: memref<32x32xf32, #tpu.memory_space<vmem>>, %arg7: memref<1x32xf32, #tpu.memory_space<vmem>>, %arg8: memref<32x64xf32, #tpu.memory_space<vmem>>, %arg9: memref<1x64xf32, #tpu.memory_space<vmem>>, %arg10: memref<64x32xf32, #tpu.memory_space<vmem>>, %arg11: memref<1x32xf32, #tpu.memory_space<vmem>>, %arg12: memref<1x8x32xf32, #tpu.memory_space<vmem>>, %arg13: memref<1x4x8x8xf32, #tpu.memory_space<vmem>>, %arg14: memref<1x4x8x8xf32, #tpu.memory_space<vmem>>, %arg15: memref<4x8x1xf32, #tpu.memory_space<vmem>>, %arg16: memref<4x8x1xf32, #tpu.memory_space<vmem>>, %arg17: memref<4x8x8xf32, #tpu.memory_space<vmem>>) attributes {dimension_semantics = [#tpu.dimension_semantics<parallel>, #tpu.dimension_semantics<arbitrary>], iteration_bounds = array<i64: 2, 1>, scalar_prefetch = 0 : i64, scratch_operands = 5 : i64, tpu.core_type = #tpu.core_type<tc>, window_params = [{transform_indices = @transform_0, window_bounds = array<i64: 1, 8, 32>}, {pipeline_mode = #tpu.pipeline_mode<synchronous>, transform_indices = @transform_1, window_bounds = array<i64: 1, 32>}, {pipeline_mode = #tpu.pipeline_mode<synchronous>, transform_indices = @transform_2, window_bounds = array<i64: 1, 32>}, {pipeline_mode = #tpu.pipeline_mode<synchronous>, transform_indices = @transform_3, window_bounds = array<i64: 32, 96>}, {pipeline_mode = #tpu.pipeline_mode<synchronous>, transform_indices = @transform_4, window_bounds = array<i64: 32, 32>}, {pipeline_mode = #tpu.pipeline_mode<synchronous>, transform_indices = @transform_5, window_bounds = array<i64: 1, 32>}, {pipeline_mode = #tpu.pipeline_mode<synchronous>, transform_indices = @transform_6, window_bounds = array<i64: 32, 64>}, {pipeline_mode = #tpu.pipeline_mode<synchronous>, transform_indices = @transform_7, window_bounds = array<i64: 1, 64>}, {pipeline_mode = #tpu.pipeline_mode<synchronous>, transform_indices = @transform_8, window_bounds = array<i64: 64, 32>}, {pipeline_mode = #tpu.pipeline_mode<synchronous>, transform_indices = @transform_9, window_bounds = array<i64: 1, 32>}, {transform_indices = @transform_10, window_bounds = array<i64: 1, 8, 32>}]} {
    %c0 = arith.constant 0 : index
    %c0_0 = arith.constant 0 : index
    %0 = vector.load %arg3[%c0, %c0_0] : memref<1x32xf32, #tpu.memory_space<vmem>>, vector<1x32xf32>
    %c0_1 = arith.constant 0 : index
    %c0_2 = arith.constant 0 : index
    %c0_3 = arith.constant 0 : index
    %1 = vector.load %arg2[%c0_1, %c0_2, %c0_3] : memref<1x8x32xf32, #tpu.memory_space<vmem>>, vector<1x8x32xf32>
    %2 = vector.shape_cast %1 : vector<1x8x32xf32> to vector<8x32xf32>
    %3 = arith.mulf %2, %2 : vector<8x32xf32>
    %cst = arith.constant dense<0.000000e+00> : vector<8xf32>
    %4 = vector.multi_reduction <add>, %3, %cst [1] : vector<8x32xf32> to vector<8xf32>
    %5 = vector.shape_cast %4 : vector<8xf32> to vector<8x1xf32>
    %cst_4 = arith.constant 3.200000e+01 : f32
    %6 = vector.broadcast %cst_4 : f32 to vector<8x1xf32>
    %7 = arith.divf %5, %6 : vector<8x1xf32>
    %cst_5 = arith.constant 1.1920929E-7 : f32
    %8 = vector.broadcast %cst_5 : f32 to vector<8x1xf32>
    %9 = arith.addf %7, %8 : vector<8x1xf32>
    %10 = math.rsqrt %9 : vector<8x1xf32>
    %11 = vector.broadcast %10 : vector<8x1xf32> to vector<8x32xf32>
    %12 = arith.mulf %2, %11 : vector<8x32xf32>
    %13 = vector.broadcast %0 : vector<1x32xf32> to vector<8x32xf32>
    %14 = arith.mulf %12, %13 : vector<8x32xf32>
    %c0_6 = arith.constant 0 : index
    %c0_7 = arith.constant 0 : index
    %15 = vector.load %arg5[%c0_6, %c0_7] : memref<32x96xf32, #tpu.memory_space<vmem>>, vector<32x96xf32>
    %cst_8 = arith.constant dense<0.000000e+00> : vector<8x96xf32>
    %16 = tpu.matmul %14, %15, %cst_8 {dimension_numbers = #tpu.dot_dimension_numbers<[1], [0], [0], [1], [0, 0, 1, 1], [], []>} : vector<8x32xf32>, vector<32x96xf32>, vector<8x96xf32> -> vector<8x96xf32>
    %17 = vector.extract_strided_slice %16 {offsets = [0, 0], sizes = [8, 32], strides = [1, 1]} : vector<8x96xf32> to vector<8x32xf32>
    %18 = vector.extract_strided_slice %16 {offsets = [0, 32], sizes = [8, 32], strides = [1, 1]} : vector<8x96xf32> to vector<8x32xf32>
    %19 = vector.extract_strided_slice %16 {offsets = [0, 64], sizes = [8, 32], strides = [1, 1]} : vector<8x96xf32> to vector<8x32xf32>
    %20 = vector.shape_cast %18 : vector<8x32xf32> to vector<1x8x4x8xf32>
    %21 = tpu.transpose %20, [0, 2, 1, 3] : vector<1x8x4x8xf32> -> vector<1x4x8x8xf32>
    %c0_9 = arith.constant 0 : index
    %c0_10 = arith.constant 0 : index
    %c0_11 = arith.constant 0 : index
    %c0_12 = arith.constant 0 : index
    %22 = vector.load %arg13[%c0_9, %c0_10, %c0_11, %c0_12] : memref<1x4x8x8xf32, #tpu.memory_space<vmem>>, vector<1x4x8x8xf32>
    tpu.vector_store %arg13[%c0_9, %c0_10, %c0_11, %c0_12], %21 {strides = array<i32>} : memref<1x4x8x8xf32, #tpu.memory_space<vmem>>, vector<1x4x8x8xf32>,
    %23 = vector.shape_cast %19 : vector<8x32xf32> to vector<1x8x4x8xf32>
    %24 = tpu.transpose %23, [0, 2, 1, 3] : vector<1x8x4x8xf32> -> vector<1x4x8x8xf32>
    %c0_13 = arith.constant 0 : index
    %c0_14 = arith.constant 0 : index
    %c0_15 = arith.constant 0 : index
    %c0_16 = arith.constant 0 : index
    %25 = vector.load %arg14[%c0_13, %c0_14, %c0_15, %c0_16] : memref<1x4x8x8xf32, #tpu.memory_space<vmem>>, vector<1x4x8x8xf32>
    tpu.vector_store %arg14[%c0_13, %c0_14, %c0_15, %c0_16], %24 {strides = array<i32>} : memref<1x4x8x8xf32, #tpu.memory_space<vmem>>, vector<1x4x8x8xf32>,
    %26 = vector.shape_cast %17 : vector<8x32xf32> to vector<8x4x8xf32>
    %27 = tpu.transpose %26, [1, 0, 2] : vector<8x4x8xf32> -> vector<4x8x8xf32>
    %cst_17 = arith.constant 0xFF800000 : f32
    %28 = vector.broadcast %cst_17 : f32 to vector<4x8x1xf32>
    %c0_18 = arith.constant 0 : index
    %c0_19 = arith.constant 0 : index
    %c0_20 = arith.constant 0 : index
    %29 = vector.load %arg15[%c0_18, %c0_19, %c0_20] : memref<4x8x1xf32, #tpu.memory_space<vmem>>, vector<4x8x1xf32>
    tpu.vector_store %arg15[%c0_18, %c0_19, %c0_20], %28 {strides = array<i32>} : memref<4x8x1xf32, #tpu.memory_space<vmem>>, vector<4x8x1xf32>,
    %cst_21 = arith.constant 0.000000e+00 : f32
    %30 = vector.broadcast %cst_21 : f32 to vector<4x8x1xf32>
    %c0_22 = arith.constant 0 : index
    %c0_23 = arith.constant 0 : index
    %c0_24 = arith.constant 0 : index
    %31 = vector.load %arg16[%c0_22, %c0_23, %c0_24] : memref<4x8x1xf32, #tpu.memory_space<vmem>>, vector<4x8x1xf32>
    tpu.vector_store %arg16[%c0_22, %c0_23, %c0_24], %30 {strides = array<i32>} : memref<4x8x1xf32, #tpu.memory_space<vmem>>, vector<4x8x1xf32>,
    %cst_25 = arith.constant 0.000000e+00 : f32
    %32 = vector.broadcast %cst_25 : f32 to vector<4x8x8xf32>
    %c0_26 = arith.constant 0 : index
    %c0_27 = arith.constant 0 : index
    %c0_28 = arith.constant 0 : index
    %33 = vector.load %arg17[%c0_26, %c0_27, %c0_28] : memref<4x8x8xf32, #tpu.memory_space<vmem>>, vector<4x8x8xf32>
    tpu.vector_store %arg17[%c0_26, %c0_27, %c0_28], %32 {strides = array<i32>} : memref<4x8x8xf32, #tpu.memory_space<vmem>>, vector<4x8x8xf32>,
    %c0_i32 = arith.constant 0 : i32
    %c1_i32 = arith.constant 1 : i32
    %34 = arith.muli %c0_i32, %c1_i32 : i32
    %c0_i32_29 = arith.constant 0 : i32
    %35 = arith.addi %c0_i32_29, %34 : i32
    %36 = arith.index_cast %35 : i32 to index
    %c0_30 = arith.constant 0 : index
    %c0_31 = arith.constant 0 : index
    %c0_32 = arith.constant 0 : index
    %37 = vector.load %arg13[%36, %c0_30, %c0_31, %c0_32] : memref<1x4x8x8xf32, #tpu.memory_space<vmem>>, vector<1x4x8x8xf32>
    %38 = vector.shape_cast %37 : vector<1x4x8x8xf32> to vector<4x8x8xf32>
    %39 = arith.index_cast %35 : i32 to index
    %c0_33 = arith.constant 0 : index
    %c0_34 = arith.constant 0 : index
    %c0_35 = arith.constant 0 : index
    %40 = vector.load %arg14[%39, %c0_33, %c0_34, %c0_35] : memref<1x4x8x8xf32, #tpu.memory_space<vmem>>, vector<1x4x8x8xf32>
    %41 = vector.shape_cast %40 : vector<1x4x8x8xf32> to vector<4x8x8xf32>
    "tpu.trace_start"() <{level = 10 : i32, message = "htd,hsd->hts"}> : () -> ()
    %cst_36 = arith.constant dense<0.000000e+00> : vector<4x8x8xf32>
    %42 = tpu.matmul %27, %38, %cst_36 {dimension_numbers = #tpu.dot_dimension_numbers<[2], [2], [1], [1], [0, 0, 0, 1, 1, 1], [0], [0]>} : vector<4x8x8xf32>, vector<4x8x8xf32>, vector<4x8x8xf32> -> vector<4x8x8xf32>
    "tpu.trace_stop"() : () -> ()
    %c0_37 = arith.constant 0 : index
    %c0_38 = arith.constant 0 : index
    %c0_39 = arith.constant 0 : index
    %43 = vector.load %arg15[%c0_37, %c0_38, %c0_39] : memref<4x8x1xf32, #tpu.memory_space<vmem>>, vector<4x8x1xf32>
    %cst_40 = arith.constant dense<0xFF800000> : vector<4x8xf32>
    %44 = vector.multi_reduction <maximumf>, %42, %cst_40 [2] : vector<4x8x8xf32> to vector<4x8xf32>
    %45 = vector.shape_cast %44 : vector<4x8xf32> to vector<4x8x1xf32>
    %46 = arith.maximumf %43, %45 : vector<4x8x1xf32>
    %47 = arith.subf %43, %46 : vector<4x8x1xf32>
    %48 = math.exp %47 : vector<4x8x1xf32>
    %49 = vector.broadcast %46 : vector<4x8x1xf32> to vector<4x8x8xf32>
    %50 = arith.subf %42, %49 : vector<4x8x8xf32>
    %51 = math.exp %50 : vector<4x8x8xf32>
    %c0_41 = arith.constant 0 : index
    %c0_42 = arith.constant 0 : index
    %c0_43 = arith.constant 0 : index
    %52 = vector.load %arg16[%c0_41, %c0_42, %c0_43] : memref<4x8x1xf32, #tpu.memory_space<vmem>>, vector<4x8x1xf32>
    %53 = arith.mulf %48, %52 : vector<4x8x1xf32>
    %cst_44 = arith.constant dense<0.000000e+00> : vector<4x8xf32>
    %54 = vector.multi_reduction <add>, %51, %cst_44 [2] : vector<4x8x8xf32> to vector<4x8xf32>
    %55 = vector.shape_cast %54 : vector<4x8xf32> to vector<4x8x1xf32>
    %56 = arith.addf %53, %55 : vector<4x8x1xf32>
    %c0_45 = arith.constant 0 : index
    %c0_46 = arith.constant 0 : index
    %c0_47 = arith.constant 0 : index
    %57 = vector.load %arg16[%c0_45, %c0_46, %c0_47] : memref<4x8x1xf32, #tpu.memory_space<vmem>>, vector<4x8x1xf32>
    tpu.vector_store %arg16[%c0_45, %c0_46, %c0_47], %56 {strides = array<i32>} : memref<4x8x1xf32, #tpu.memory_space<vmem>>, vector<4x8x1xf32>,
    %c0_48 = arith.constant 0 : index
    %c0_49 = arith.constant 0 : index
    %c0_50 = arith.constant 0 : index
    %58 = vector.load %arg17[%c0_48, %c0_49, %c0_50] : memref<4x8x8xf32, #tpu.memory_space<vmem>>, vector<4x8x8xf32>
    %59 = vector.broadcast %48 : vector<4x8x1xf32> to vector<4x8x8xf32>
    %60 = arith.mulf %59, %58 : vector<4x8x8xf32>
    "tpu.trace_start"() <{level = 10 : i32, message = "hts,hsd->htd"}> : () -> ()
    %cst_51 = arith.constant dense<0.000000e+00> : vector<4x8x8xf32>
    %61 = tpu.matmul %51, %41, %cst_51 {dimension_numbers = #tpu.dot_dimension_numbers<[2], [1], [1], [2], [0, 0, 0, 1, 1, 2], [0], [0]>} : vector<4x8x8xf32>, vector<4x8x8xf32>, vector<4x8x8xf32> -> vector<4x8x8xf32>
    "tpu.trace_stop"() : () -> ()
    %62 = arith.addf %60, %61 : vector<4x8x8xf32>
    %c0_52 = arith.constant 0 : index
    %c0_53 = arith.constant 0 : index
    %c0_54 = arith.constant 0 : index
    %63 = vector.load %arg17[%c0_52, %c0_53, %c0_54] : memref<4x8x8xf32, #tpu.memory_space<vmem>>, vector<4x8x8xf32>
    tpu.vector_store %arg17[%c0_52, %c0_53, %c0_54], %62 {strides = array<i32>} : memref<4x8x8xf32, #tpu.memory_space<vmem>>, vector<4x8x8xf32>,
    %c0_55 = arith.constant 0 : index
    %c0_56 = arith.constant 0 : index
    %c0_57 = arith.constant 0 : index
    %64 = vector.load %arg15[%c0_55, %c0_56, %c0_57] : memref<4x8x1xf32, #tpu.memory_space<vmem>>, vector<4x8x1xf32>
    tpu.vector_store %arg15[%c0_55, %c0_56, %c0_57], %46 {strides = array<i32>} : memref<4x8x1xf32, #tpu.memory_space<vmem>>, vector<4x8x1xf32>,
    %c1_i32_58 = arith.constant 1 : i32
    %c0_59 = arith.constant 0 : index
    %c0_60 = arith.constant 0 : index
    %c0_61 = arith.constant 0 : index
    %65 = vector.load %arg16[%c0_59, %c0_60, %c0_61] : memref<4x8x1xf32, #tpu.memory_space<vmem>>, vector<4x8x1xf32>
    %66 = tpu.reciprocal %65 : vector<4x8x1xf32> -> vector<4x8x1xf32>
    %c0_62 = arith.constant 0 : index
    %c0_63 = arith.constant 0 : index
    %c0_64 = arith.constant 0 : index
    %67 = vector.load %arg17[%c0_62, %c0_63, %c0_64] : memref<4x8x8xf32, #tpu.memory_space<vmem>>, vector<4x8x8xf32>
    %68 = vector.broadcast %66 : vector<4x8x1xf32> to vector<4x8x8xf32>
    %69 = arith.mulf %67, %68 : vector<4x8x8xf32>
    %70 = tpu.transpose %69, [1, 0, 2] : vector<4x8x8xf32> -> vector<8x4x8xf32>
    %71 = vector.shape_cast %70 : vector<8x4x8xf32> to vector<8x32xf32>
    %c0_65 = arith.constant 0 : index
    %c0_66 = arith.constant 0 : index
    %72 = vector.load %arg6[%c0_65, %c0_66] : memref<32x32xf32, #tpu.memory_space<vmem>>, vector<32x32xf32>
    %cst_67 = arith.constant dense<0.000000e+00> : vector<8x32xf32>
    %73 = tpu.matmul %71, %72, %cst_67 {dimension_numbers = #tpu.dot_dimension_numbers<[1], [0], [0], [1], [0, 0, 1, 1], [], []>} : vector<8x32xf32>, vector<32x32xf32>, vector<8x32xf32> -> vector<8x32xf32>
    %c0_68 = arith.constant 0 : index
    %c0_69 = arith.constant 0 : index
    %74 = vector.load %arg7[%c0_68, %c0_69] : memref<1x32xf32, #tpu.memory_space<vmem>>, vector<1x32xf32>
    %75 = vector.broadcast %74 : vector<1x32xf32> to vector<8x32xf32>
    %76 = arith.addf %73, %75 : vector<8x32xf32>
    %77 = arith.addf %2, %76 : vector<8x32xf32>
    %c0_70 = arith.constant 0 : index
    %c0_71 = arith.constant 0 : index
    %78 = vector.load %arg4[%c0_70, %c0_71] : memref<1x32xf32, #tpu.memory_space<vmem>>, vector<1x32xf32>
    %79 = arith.mulf %77, %77 : vector<8x32xf32>
    %cst_72 = arith.constant dense<0.000000e+00> : vector<8xf32>
    %80 = vector.multi_reduction <add>, %79, %cst_72 [1] : vector<8x32xf32> to vector<8xf32>
    %81 = vector.shape_cast %80 : vector<8xf32> to vector<8x1xf32>
    %cst_73 = arith.constant 3.200000e+01 : f32
    %82 = vector.broadcast %cst_73 : f32 to vector<8x1xf32>
    %83 = arith.divf %81, %82 : vector<8x1xf32>
    %cst_74 = arith.constant 1.1920929E-7 : f32
    %84 = vector.broadcast %cst_74 : f32 to vector<8x1xf32>
    %85 = arith.addf %83, %84 : vector<8x1xf32>
    %86 = math.rsqrt %85 : vector<8x1xf32>
    %87 = vector.broadcast %86 : vector<8x1xf32> to vector<8x32xf32>
    %88 = arith.mulf %77, %87 : vector<8x32xf32>
    %89 = vector.broadcast %78 : vector<1x32xf32> to vector<8x32xf32>
    %90 = arith.mulf %88, %89 : vector<8x32xf32>
    %c0_75 = arith.constant 0 : index
    %c0_76 = arith.constant 0 : index
    %91 = vector.load %arg8[%c0_75, %c0_76] : memref<32x64xf32, #tpu.memory_space<vmem>>, vector<32x64xf32>
    %cst_77 = arith.constant dense<0.000000e+00> : vector<8x64xf32>
    %92 = tpu.matmul %90, %91, %cst_77 {dimension_numbers = #tpu.dot_dimension_numbers<[1], [0], [0], [1], [0, 0, 1, 1], [], []>} : vector<8x32xf32>, vector<32x64xf32>, vector<8x64xf32> -> vector<8x64xf32>
    %c0_78 = arith.constant 0 : index
    %c0_79 = arith.constant 0 : index
    %93 = vector.load %arg9[%c0_78, %c0_79] : memref<1x64xf32, #tpu.memory_space<vmem>>, vector<1x64xf32>
    %94 = vector.broadcast %93 : vector<1x64xf32> to vector<8x64xf32>
    %95 = arith.addf %92, %94 : vector<8x64xf32>
    %cst_80 = arith.constant 5.000000e-01 : f32
    %96 = vector.broadcast %cst_80 : f32 to vector<8x64xf32>
    %97 = arith.mulf %96, %95 : vector<8x64xf32>
    %cst_81 = arith.constant 0.707106769 : f32
    %98 = vector.broadcast %cst_81 : f32 to vector<8x64xf32>
    %99 = arith.mulf %95, %98 : vector<8x64xf32>
    %100 = math.erf %99 : vector<8x64xf32>
    %cst_82 = arith.constant 1.000000e+00 : f32
    %101 = vector.broadcast %cst_82 : f32 to vector<8x64xf32>
    %102 = arith.addf %101, %100 : vector<8x64xf32>
    %103 = arith.mulf %97, %102 : vector<8x64xf32>
    %c0_83 = arith.constant 0 : index
    %c0_84 = arith.constant 0 : index
    %104 = vector.load %arg10[%c0_83, %c0_84] : memref<64x32xf32, #tpu.memory_space<vmem>>, vector<64x32xf32>
    %cst_85 = arith.constant dense<0.000000e+00> : vector<8x32xf32>
    %105 = tpu.matmul %103, %104, %cst_85 {dimension_numbers = #tpu.dot_dimension_numbers<[1], [0], [0], [1], [0, 0, 1, 1], [], []>} : vector<8x64xf32>, vector<64x32xf32>, vector<8x32xf32> -> vector<8x32xf32>
    %c0_86 = arith.constant 0 : index
    %c0_87 = arith.constant 0 : index
    %106 = vector.load %arg11[%c0_86, %c0_87] : memref<1x32xf32, #tpu.memory_space<vmem>>, vector<1x32xf32>
    %107 = vector.broadcast %106 : vector<1x32xf32> to vector<8x32xf32>
    %108 = arith.addf %105, %107 : vector<8x32xf32>
    %109 = arith.addf %77, %108 : vector<8x32xf32>
    %c0_88 = arith.constant 0 : index
    %c0_89 = arith.constant 0 : index
    %c0_90 = arith.constant 0 : index
    %110 = vector.load %arg12[%c0_88, %c0_89, %c0_90] : memref<1x8x32xf32, #tpu.memory_space<vmem>>, vector<1x8x32xf32>
    %111 = vector.shape_cast %110 : vector<1x8x32xf32> to vector<8x32xf32>
    %112 = vector.shape_cast %109 : vector<8x32xf32> to vector<1x8x32xf32>
    tpu.vector_store %arg12[%c0_88, %c0_89, %c0_90], %112 {strides = array<i32>} : memref<1x8x32xf32, #tpu.memory_space<vmem>>, vector<1x8x32xf32>,
    return
  }
  func.func @transform_0(%arg0: i32, %arg1: i32) -> (i32, i32, i32) {
    %c0_i32 = arith.constant 0 : i32
    %c0_i32_0 = arith.constant 0 : i32
    %c0_i32_1 = arith.constant 0 : i32
    return %arg0, %c0_i32, %c0_i32_0 : i32, i32, i32
  }
  func.func @transform_1(%arg0: i32, %arg1: i32) -> (i32, i32) {
    %c0_i32 = arith.constant 0 : i32
    %c0_i32_0 = arith.constant 0 : i32
    %c0_i32_1 = arith.constant 0 : i32
    return %c0_i32, %c0_i32_0 : i32, i32
  }
  func.func @transform_2(%arg0: i32, %arg1: i32) -> (i32, i32) {
    %c0_i32 = arith.constant 0 : i32
    %c0_i32_0 = arith.constant 0 : i32
    %c0_i32_1 = arith.constant 0 : i32
    return %c0_i32, %c0_i32_0 : i32, i32
  }
  func.func @transform_3(%arg0: i32, %arg1: i32) -> (i32, i32) {
    %c0_i32 = arith.constant 0 : i32
    %c0_i32_0 = arith.constant 0 : i32
    %c0_i32_1 = arith.constant 0 : i32
    return %c0_i32, %c0_i32_0 : i32, i32
  }
  func.func @transform_4(%arg0: i32, %arg1: i32) -> (i32, i32) {
    %c0_i32 = arith.constant 0 : i32
    %c0_i32_0 = arith.constant 0 : i32
    %c0_i32_1 = arith.constant 0 : i32
    return %c0_i32, %c0_i32_0 : i32, i32
  }
  func.func @transform_5(%arg0: i32, %arg1: i32) -> (i32, i32) {
    %c0_i32 = arith.constant 0 : i32
    %c0_i32_0 = arith.constant 0 : i32
    %c0_i32_1 = arith.constant 0 : i32
    return %c0_i32, %c0_i32_0 : i32, i32
  }
  func.func @transform_6(%arg0: i32, %arg1: i32) -> (i32, i32) {
    %c0_i32 = arith.constant 0 : i32
    %c0_i32_0 = arith.constant 0 : i32
    %c0_i32_1 = arith.constant 0 : i32
    return %c0_i32, %c0_i32_0 : i32, i32
  }
  func.func @transform_7(%arg0: i32, %arg1: i32) -> (i32, i32) {
    %c0_i32 = arith.constant 0 : i32
    %c0_i32_0 = arith.constant 0 : i32
    %c0_i32_1 = arith.constant 0 : i32
    return %c0_i32, %c0_i32_0 : i32, i32
  }
  func.func @transform_8(%arg0: i32, %arg1: i32) -> (i32, i32) {
    %c0_i32 = arith.constant 0 : i32
    %c0_i32_0 = arith.constant 0 : i32
    %c0_i32_1 = arith.constant 0 : i32
    return %c0_i32, %c0_i32_0 : i32, i32
  }
  func.func @transform_9(%arg0: i32, %arg1: i32) -> (i32, i32) {
    %c0_i32 = arith.constant 0 : i32
    %c0_i32_0 = arith.constant 0 : i32
    %c0_i32_1 = arith.constant 0 : i32
    return %c0_i32, %c0_i32_0 : i32, i32
  }
  func.func @transform_10(%arg0: i32, %arg1: i32) -> (i32, i32, i32) {
    %c0_i32 = arith.constant 0 : i32
    %c0_i32_0 = arith.constant 0 : i32
    return %arg0, %arg1, %c0_i32 : i32, i32, i32
  }
}

</mosaic_0001>

<bundles_post_ra>
// kernel: tpu_custom_call.1
= control target key start
LH: loop header
LB: loop body
LE: loop exit
PB: predicated region body
PF: predicated region fallthrough
CT: control target
= control target key end

     0   :  { %15 = vsyncpa [#allocation8], 0  ;;  %s3215_s0 = inlined_call_operand.hbm [shape: f32[2,8,32], index: 0, kind: input, shape index: {}]   ;;  %s3216_s1 = inlined_call_operand.vmem [shape: f32[1,32], index: 1, kind: input, shape index: {}]   ;;  %s3217_s2 = inlined_call_operand.vmem [shape: f32[1,32], index: 2, kind: input, shape index: {}]   ;;  %s3218_s3 = inlined_call_operand.vmem [shape: f32[32,96], index: 3, kind: input, shape index: {}]   ;;  %s3219_s4 = inlined_call_operand.vmem [shape: f32[32,32], index: 4, kind: input, shape index: {}]   ;;  %s3220_s5 = inlined_call_operand.vmem [shape: f32[1,32], index: 5, kind: input, shape index: {}]   ;;  %s3221_s6 = inlined_call_operand.vmem [shape: f32[32,64], index: 6, kind: input, shape index: {}]   ;;  %s3222_s7 = inlined_call_operand.vmem [shape: f32[1,64], index: 7, kind: input, shape index: {}]   ;;  %s3223_s8 = inlined_call_operand.vmem [shape: f32[64,32], index: 8, kind: input, shape index: {}]   ;;  %s3224_s9 = inlined_call_operand.vmem [shape: f32[1,32], index: 9, kind: input, shape index: {}]   ;;  %s3225_s10 = inlined_call_operand.hbm [shape: f32[2,8,32], index: 10, kind: output, shape index: {}]  }
   0x1   :  { %17 = vsyncpa [#allocation8 + $0x1], 0 }
   0x2   :  { %18 = vsyncpa [#allocation9], 0 }
   0x3   :  { %20 = vsyncpa [#allocation9 + $0x1], 0  ;;  %s2712_s13 = smov 0   ;;  %s2714_s14 = smov 0  }
   0x4   :  { %s2716_s15 = smov 0   ;;  %s2718_s16 = smov 0  }
   0x5   :  { %s2720_s17 = smov 0   ;;  %s2722_s18 = smov 0  }
   0x6 LB: > { %3228 = sst [smem:[#allocation13_spill]] %s2619_s13  ;;  %s2249_s19 = sadd.s32 4294967295, %s2639_s18   ;;  %s2639_s18 = sphi %s2722_s18, %s26_s18   ;;  %s2635_s17 = sphi %s2720_s17, %s3245_s17   ;;  %s2631_s16 = sphi %s2718_s16, %s3244_s16   ;;  %s2627_s15 = sphi %s2716_s15, %s3243_s15   ;;  %s2623_s14 = sphi %s2714_s14, %s3242_s14   ;;  %s2619_s13 = sphi %s2712_s13, %s3241_s13  }
   0x7   : > { %s2250_s20 = sadd.s32 4294967294, %s2639_s18   ;;  %s38_s21 = sadd.s32 1, %s2635_s17 }
   0x8   : > { %s45_s22 = sadd.s32 1, %s2627_s15  ;;  %p40_p0 = scmp.ge.s32.totalorder %s38_s21, 2 }
   0x9   : > { %p52_p1 = scmp.ne.s32.totalorder %s2627_s15, %s2623_s14  ;;  %p53_p2 = scmp.eq.s32.totalorder %s2639_s18, 0 }
   0xa   : > { %p58_p3 = scmp.ne.s32.totalorder %s2623_s14, %s2619_s13  ;;  %s3247_s21 = smov (%p40_p0, %s38_s21), 0 }
   0xb   : > { %3229 = sst [smem:[#allocation14_spill]] %s3247_s21  ;;  %p2753_p4 = por %p53_p2, %p52_p1 }
   0xc   : > { %p59_p5 = scmp.eq.s32.totalorder %s2249_s19, 0  ;;  %s42_s24 = ssub.s32 %s2635_s17, %s3247_s21 }
   0xd   : > { %p273_p6 = scmp.eq.s32.totalorder %s2249_s19, 1  ;;  %p43_p7 = scmp.eq.s32.totalorder %s42_s24, 0 }
   0xe   : > { %p2759_p8 = por %p59_p5, %p58_p3  ;;  %p279_p10 = scmp.eq.s32.totalorder %s2250_s20, 1 }
   0xf   : > { %p2763_p9 = por %p273_p6, %p52_p1  ;;  %p2435_p13 = scmp.lt.s32.totalorder %s2639_s18, 2 }
  0x10   : > { %s2768_s27 = scalar_select %p43_p7, %s2627_s15, %s45_s22  }
  0x11   : > { %p2770_p11 = por %p279_p10, %p58_p3  ;;  %s326_s29 = sand.u32 1, %s2627_s15  }
  0x12   : > { %3233 = sst [smem:[#allocation15_spill]] %s2768_s27  ;;  %s2253_s30 = sshll.u32 %s326_s29, 3 }
  0x13   : > { %s3234_s28 = scalar_select %p2770_p11, 1, 0 }
  0x14   : > { %s2254_s11 = sshll.u32 %s2635_s17, 7  ;;  %s330_s21 = scalar_lea.vmem [#allocation7], %s2253_s30 }
  0x15   : > { %s335_s24 = scalar_lea.hbm %s3215_s0, %s2254_s11  ;;  %s337_s13 = sshll.u32 %s330_s21, 4  ;;  %s338_s13 = int_to_ptr.vmem [resolvable:$true] %s337_s13 }
  0x16   : > { %p2783_p0 = pnand %p2435_p13, %p2753_p4  ;;  %p2255_p1 = scmp.ge.s32.totalorder %s2639_s18, 1 }
  0x17   : > { %p342_p2 = scmp.lt.s32.totalorder %s2639_s18, 3  ;;  %s327_s22 = scalar_lea.sflag [#allocation8], %s326_s29 }
  0x18   : > { %p2533_p3 = pneg %p2783_p0  ;;  %s2544_s27 = scalar_lea.vmem %s338_s13, 128 }
  0x19   : > { %p2545_p5 = scmp.ne.s32.totalorder %s338_s13, %s2544_s27  ;;  %s2641_s12 = smov [#allocation7]  }
  0x1a   : > { %s2549_s11 = sshll.u32 %s2641_s12, 4  ;;  %s2550_s11 = int_to_ptr.vmem [resolvable:$false] %s2549_s11 }
  0x1b   : > { %p2547_p6 = pnand %p2545_p5, %p2533_p3  ;;  %s2551_s21 = scalar_lea.vmem %s2550_s11, 256 }
  0x1c   : > { %p2552_p10 = scmp.lt.s32.totalorder %s338_s13, %s2550_s11  ;;  %p2553_p12 = scmp.lt.s32.totalorder %s2551_s21, %s2544_s27 }
  0x1d   : > { %p2548_p7 = pneg %p2547_p6 }
  0x1e   : > { %p2554_p4 = por %p2553_p12, %p2552_p10 }
  0x20   : > { %p2555_p13 = pnand %p2554_p4, %p2548_p7 }
  0x22   : > { %2558 = shalt.err (!%p2555_p13)
}
  0x23   : > { %2430 = dma.hbm_to_vmem [thread:$0]  (!%p2783_p0), %s335_s24, 128, %s338_s13, %s327_s22  }
  0x24   : > { %p343_p11 = pnand %p2255_p1, %p342_p2 }
  0x25   : > { %s2798_s23 = sand.u32 (!%p343_p11), 1, %s2623_s14  }
  0x26   : > { %346 = sbr.rel (%p343_p11) target bundleno = 2368 (0x940), region = 60  ;;  %s2256_s27 = sshll.u32 (!%p343_p11), %s2798_s23, 3 }
  0x27   : > { %s349_s29 = scalar_lea.sflag (!%p343_p11), [#allocation8], %s2798_s23  ;;  %s352_s30 = scalar_lea.vmem (!%p343_p11), [#allocation7], %s2256_s27 }
  0x2b   : > { %2610 = dma.done.wait (%p2759_p8), %s349_s29, 128  }
  0x2c   : > { %2612 = vsyncadd (%p2759_p8), %s349_s29, 4294967168  ;;  %v2808_v0 = vld [vmem:[%s352_s30] sm:$0xff]  ;;  %vm392_vm0 = vcmask 261120   ;;  %v411_v3 = vld [vmem:[%s3218_s3 + $0x18] sm:$0xff]  ;;  %v2642_v4 = vmov 0.0   ;;  %vm2643_vm1 = vmmov 0   ;;  %v509_v23 = vlaneseq }
  0x2d   : > { %v391_v1 = vmul.f32 %v2808_v0, %v2808_v0  ;;  %2331 = vmatprep.subr.mxu1 %v2642_v4  ;;  %v410_v5 = vld [vmem:[%s3218_s3 + $0x10] sm:$0xff]  ;;  %2339 = vmatprep.mubr.msk.f32.mxu1 %vm2643_vm1, %v2642_v4  ;;  %v409_v6 = vld [vmem:[%s3218_s3 + $0x8] sm:$0xff]  ;;  %v408_v7 = vld [vmem:[%s3218_s3] sm:$0xff]  ;;  %s2644_s30 = smov 112   ;;  %s2645_s13 = smov 120   ;;  %vm640_vm2 = vcmask 64512  }
  0x2e   : > { %2332 = vmatpush3.msra.mxu1 %v411_v3  ;;  %2352 = vmatprep.subr.mxu0 %v2642_v4  ;;  %v2258_v12 = vld [vmem:[%s3216_s1] ss:$0 sm:$0xff]  ;;  %s2646_s19 = smov 104   ;;  %s2647_s24 = smov 96   ;;  %945 = vst.msk [vmem:[#allocation6] sm:$0xff] %vm640_vm2, %v2642_v4  ;;  %946 = vst.msk [vmem:[#allocation6 + $0x8] sm:$0xff] %vm640_vm2, %v2642_v4 }
  0x2f   : > { %v393_v2 = vsel %vm392_vm0, %v391_v1, 0.0  ;;  %2333 = vmatprep.subr.mxu1 %v2642_v4  ;;  %2354 = vmatprep.mubr.msk.f32.mxu0 %vm2643_vm1, %v2642_v4  ;;  %947 = vst.msk [vmem:[#allocation6 + $0x10] sm:$0xff] %vm640_vm2, %v2642_v4  ;;  %948 = vst.msk [vmem:[#allocation6 + $0x18] sm:$0xff] %vm640_vm2, %v2642_v4  ;;  %v2648_v21 = vmov 1983009808   ;;  %v510_v26 = vshrl.u32 %v509_v23, 7 }
  0x30   : > { %394 = vadd.xlane.f32.xlu0 %v393_v2  ;;  %2334 = vmatpush3.msra.mxu1 %v410_v5  ;;  %v507_v22 = vunpack.c.l.s4 %v2648_v21  ;;  %v2649_v27 = vmov 1934713408   ;;  %vm936_vm3 = vcmask 7168   ;;  %s2652_s20 = smov 64   ;;  %vm1870_vm4 = vcmask 130048   ;;  %s388_s25 = scalar_lea.vmem [#allocation10], %s2256_s27 }
  0x31   : > { %2335 = vmatprep.subr.mxu1 %v2642_v4  ;;  %v539_v28 = vunpack.c.l.s4 %v2649_v27  ;;  %941 = vst.msk [vmem:[#allocation5] sm:$0xff] %vm936_vm3, %v2642_v4  ;;  %942 = vst.msk [vmem:[#allocation5 + $0x8] sm:$0xff] %vm936_vm3, %v2642_v4  ;;  %vm1872_vm5 = vcmask 195584   ;;  %vm2079_vm6 = vcmask 523264   ;;  %s2170_s22 = sshll.u32 %s388_s25, 4  ;;  %s2156_s29 = scalar_lea.sflag [#allocation9], %s2798_s23  ;;  %s2171_s22 = int_to_ptr.vmem [resolvable:$true] %s2170_s22 }
  0x32   : > { %2336 = vmatpush3.msra.mxu1 %v409_v6  ;;  %v508_v25 = vunpack.c.0.s8 %v507_v22  ;;  %943 = vst.msk [vmem:[#allocation5 + $0x10] sm:$0xff] %vm936_vm3, %v2642_v4  ;;  %944 = vst.msk [vmem:[#allocation5 + $0x18] sm:$0xff] %vm936_vm3, %v2642_v4 }
  0x33   : > { %2337 = vmatprep.subr.mxu1 %v2642_v4  ;;  %v540_v35 = vunpack.c.0.s8 %v539_v28 }
  0x34   : > { %2338 = vmatpush3.msra.mxu1 %v408_v7  ;;  %v2869_v32 = vsub.s32 %v508_v25, %v510_v26 }
  0x35   : > { %2342 = vmatprep.subr.mxu1 %v2642_v4  ;;  %v2879_v45 = vsub.s32 %v540_v35, %v510_v26 }
  0xb9   : > { %v395_v8 = vpop.xlane.xlu0 %394 }
  0xba   : > { %v397_v9 = vmul.f32 0.03125, %v395_v8 }
  0xbc   : > { %v398_v10 = vadd.f32 1.1920929e-07, %v397_v9 }
  0xbe   : > { %2501 = vrsqrt.f32 %v398_v10 }
  0xcb   : > { %v2502_v11 = vpop.eup %2501 }
  0xcc   : > { %v400_v13 = vmul.f32 %v2502_v11, %v2808_v0 }
  0xce   : > { %v407_v14 = vmul.f32 %v2258_v12, %v400_v13 }
  0xd0   : > { %2340 = vmatmul.mubr.msk.f32.vlgmr.msra.gmra.mxu1 %vm392_vm0, %v407_v14 }
  0xd1   : > { %2344 = vmatprep.mubr.msk.f32.mxu1 %vm2643_vm1, %v2642_v4 }
 0x190   : > { %v2842_v15 = vpop.f32.mrf.mxu1 }
 0x191   : > { %488 = vrot.lane.b32.xlu1 %v2842_v15, %s2644_s30  ;;  %486 = vrot.lane.b32.xlu0 %v2842_v15, %s2645_s13  ;;  %s2559_s30 = scalar_lea.vmem %s2171_s22, 128 }
 0x192   : > { %v2341_v16 = vpop.f32.mrf.mxu1  ;;  %p2560_p8 = scmp.ne.s32.totalorder %s2171_s22, %s2559_s30 }
 0x194   : > { %p2561_p11 = pnand %p2560_p8, %p2763_p9 }
 0x195   : > { %490 = vrot.lane.b32.xlu1 %v2842_v15, %s2646_s19  ;;  %s2653_s19 = smov 16  }
 0x196   : > { %p2562_p12 = pneg %p2561_p11 }
 0x199   : > { %492 = vrot.lane.b32.xlu1 %v2842_v15, %s2647_s24 }
 0x203   : > { %v2856_v17 = vpop.permute.xlu0 %486  ;;  %v2859_v18 = vpop.permute.xlu1 %488 }
 0x204   : > { %494 = vrot.lane.b32.xlu1 %v2856_v17, %s2647_s24  ;;  %v800_v33 = vcombine.low %v2842_v15, %v2859_v18  ;;  %v801_v34 = vcombine.high %v2842_v15, %v2859_v18 }
 0x206   : > { %v808_v43 = vrot.slane %v800_v33, %v2869_v32  ;;  %v815_v44 = vrot.slane %v801_v34, %v2869_v32 }
 0x207   : > { %v2862_v19 = vpop.permute.xlu1 %490 }
 0x208   : > { %496 = vrot.lane.b32.xlu1 %v2859_v18, %s2647_s24  ;;  %v816_v29 = vcombine.low %v2856_v17, %v2862_v19  ;;  %v817_v30 = vcombine.high %v2856_v17, %v2862_v19 }
 0x20a   : > { %v824_v38 = vrot.slane %v816_v29, %v2869_v32  ;;  %v831_v39 = vrot.slane %v817_v30, %v2869_v32 }
 0x20b   : > { %v493_v20 = vpop.permute.xlu1 %492 }
 0x20c   : > { %498 = vrot.lane.b32.xlu1 %v2862_v19, %s2647_s24  ;;  %v832_v50 = vcombine.low %v808_v43, %v824_v38  ;;  %v833_v51 = vcombine.high %v808_v43, %v824_v38  ;;  %v848_v52 = vcombine.low %v815_v44, %v831_v39  ;;  %v849_v53 = vcombine.high %v815_v44, %v831_v39  ;;  %s2654_s24 = smov 8  }
 0x20e   : > { %v840_v62 = vrot.slane %v832_v50, %v2879_v45  ;;  %v847_v63 = vrot.slane %v833_v51, %v2879_v45  ;;  %v856_v1 = vrot.slane %v848_v52, %v2879_v45  ;;  %v863_v2 = vrot.slane %v849_v53, %v2879_v45 }
 0x210   : > { %v868_v12 = vcombine.low %v840_v62, %v847_v63  ;;  %v2264_v13 = vcombine.high %v840_v62, %v847_v63  ;;  %v884_v14 = vcombine.low %v856_v1, %v863_v2  ;;  %v2265_v16 = vcombine.high %v856_v1, %v863_v2 }
 0x212   : > { %v875_v28 = vrot.slane %v868_v12, %v2869_v32  ;;  %v883_v29 = vrot.slane %v2264_v13, %v2869_v32  ;;  %v891_v30 = vrot.slane %v884_v14, %v2869_v32 }
 0x214   : > { %v901_v39 = vcombine.high %v875_v28, %v883_v29 }
 0x216   : > { %v915_v43 = vrot.slane %v901_v39, %v2879_v45 }
 0x276   : > { %v495_v24 = vpop.permute.xlu1 %494 }
 0x27a   : > { %v497_v31 = vpop.permute.xlu1 %496 }
 0x27b   : > { %v504_v36 = vcombine.low %v493_v20, %v497_v31  ;;  %v505_v37 = vcombine.high %v493_v20, %v497_v31  ;;  %v899_v31 = vrot.slane %v2265_v16, %v2869_v32 }
 0x27d   : > { %v512_v46 = vrot.slane %v504_v36, %v2869_v32  ;;  %v519_v47 = vrot.slane %v505_v37, %v2869_v32  ;;  %v900_v37 = vcombine.low %v875_v28, %v883_v29  ;;  %v916_v38 = vcombine.low %v891_v30, %v899_v31 }
 0x27e   : > { %v499_v40 = vpop.permute.xlu1 %498 }
 0x27f   : > { %v520_v41 = vcombine.low %v495_v24, %v499_v40  ;;  %v521_v42 = vcombine.high %v495_v24, %v499_v40  ;;  %v917_v40 = vcombine.high %v891_v30, %v899_v31 }
 0x281   : > { %v528_v48 = vrot.slane %v520_v41, %v2869_v32  ;;  %v535_v49 = vrot.slane %v521_v42, %v2869_v32  ;;  %v908_v41 = vrot.slane %v900_v37, %v2879_v45  ;;  %v924_v42 = vrot.slane %v916_v38, %v2879_v45 }
 0x282   : > { %v931_v44 = vrot.slane %v917_v40, %v2879_v45 }
 0x283   : > { %v536_v54 = vcombine.low %v512_v46, %v528_v48  ;;  %v537_v55 = vcombine.high %v512_v46, %v528_v48  ;;  %v552_v56 = vcombine.low %v519_v47, %v535_v49  ;;  %v553_v57 = vcombine.high %v519_v47, %v535_v49 }
 0x284   : > { %v932_v48 = vcombine.low %v908_v41, %v924_v42  ;;  %v934_v49 = vcombine.low %v915_v43, %v931_v44  ;;  %v933_v51 = vcombine.high %v908_v41, %v924_v42  ;;  %v935_v53 = vcombine.high %v915_v43, %v931_v44 }
 0x285   : > { %v544_v58 = vrot.slane %v536_v54, %v2879_v45  ;;  %v551_v59 = vrot.slane %v537_v55, %v2879_v45  ;;  %v560_v60 = vrot.slane %v552_v56, %v2879_v45  ;;  %v567_v61 = vrot.slane %v553_v57, %v2879_v45 }
 0x286   : > { %v2650_v54 = vmov -inf  }
 0x287   : > { %v572_v3 = vcombine.low %v544_v58, %v551_v59  ;;  %v2260_v5 = vcombine.high %v544_v58, %v551_v59  ;;  %v588_v6 = vcombine.low %v560_v60, %v567_v61  ;;  %v2261_v7 = vcombine.high %v560_v60, %v567_v61  ;;  %937 = vst.msk [vmem:[#allocation4] sm:$0xff] %vm936_vm3, %v2650_v54 }
 0x288   : > { %938 = vst.msk [vmem:[#allocation4 + $0x8] sm:$0xff] %vm936_vm3, %v2650_v54  ;;  %939 = vst.msk [vmem:[#allocation4 + $0x10] sm:$0xff] %vm936_vm3, %v2650_v54 }
 0x289   : > { %v579_v8 = vrot.slane %v572_v3, %v2869_v32  ;;  %v587_v9 = vrot.slane %v2260_v5, %v2869_v32  ;;  %v595_v10 = vrot.slane %v588_v6, %v2869_v32  ;;  %v603_v11 = vrot.slane %v2261_v7, %v2869_v32  ;;  %940 = vst.msk [vmem:[#allocation4 + $0x18] sm:$0xff] %vm936_vm3, %v2650_v54 }
 0x28a   : > { %v2651_v5 = vmov 0  }
 0x28b   : > { %v604_v20 = vcombine.low %v579_v8, %v587_v9  ;;  %v605_v21 = vcombine.high %v579_v8, %v587_v9  ;;  %v620_v22 = vcombine.low %v595_v10, %v603_v11  ;;  %v621_v23 = vcombine.high %v595_v10, %v603_v11  ;;  %2499 = vset.pattern.permute.xlu1 %v2651_v5 }
 0x28c   : > { %2500 = vset.pattern.permute.xlu0 %v2651_v5 }
 0x28d   : > { %v612_v24 = vrot.slane %v604_v20, %v2879_v45  ;;  %v619_v25 = vrot.slane %v605_v21, %v2879_v45  ;;  %v628_v26 = vrot.slane %v620_v22, %v2879_v45  ;;  %v635_v27 = vrot.slane %v621_v23, %v2879_v45 }
 0x28e   : > { %v2965_v6 = vld [vmem:[#allocation4] sm:$0xff] }
 0x28f   : > { %v636_v33 = vcombine.low %v612_v24, %v628_v26  ;;  %v637_v34 = vcombine.high %v612_v24, %v628_v26  ;;  %v638_v35 = vcombine.low %v619_v25, %v635_v27  ;;  %v639_v36 = vcombine.high %v619_v25, %v635_v27  ;;  %v2970_v9 = vld [vmem:[#allocation4 + $0x8] sm:$0xff] }
 0x291   : > { %641 = vst.msk [vmem:[#allocation2] sm:$0xff] %vm640_vm2, %v636_v33  ;;  %642 = vst.msk [vmem:[#allocation2 + $0x8] sm:$0xff] %vm640_vm2, %v637_v34 }
 0x292   : > { %643 = vst.msk [vmem:[#allocation2 + $0x10] sm:$0xff] %vm640_vm2, %v638_v35  ;;  %644 = vst.msk [vmem:[#allocation2 + $0x18] sm:$0xff] %vm640_vm2, %v639_v36 }
 0x298   : > { %v949_v46 = vld [vmem:[#allocation2] sm:$0xff]  ;;  %v950_v50 = vld [vmem:[#allocation2 + $0x8] sm:$0xff] }
 0x299   : > { %v951_v47 = vld [vmem:[#allocation2 + $0x10] sm:$0xff]  ;;  %2343 = vmatpush3.xpose.msk.msra.mxu1 %vm640_vm2, %v949_v46  ;;  %v952_v52 = vld [vmem:[#allocation2 + $0x18] sm:$0xff] }
 0x29a   : > { %2353 = vmatpush3.xpose.msk.msra.mxu0 %vm640_vm2, %v951_v47  ;;  %2347 = vmatprep.subr.mxu1 %v2642_v4 }
 0x29b   : > { %2362 = vmatprep.subr.mxu0 %v2642_v4 }
 0x29c   : > { %2345 = vmatmul.mubr.msk.f32.vlgmr.msra.gmra.mxu1 %vm640_vm2, %v932_v48 }
 0x29d   : > { %2355 = vmatmul.mubr.msk.f32.vlgmr.msra.gmra.mxu0 %vm640_vm2, %v934_v49  ;;  %2348 = vmatpush3.xpose.msk.msra.mxu1 %vm640_vm2, %v950_v50 }
 0x29e   : > { %2349 = vmatprep.mubr.msk.f32.mxu1 %vm2643_vm1, %v2642_v4  ;;  %2357 = vmatprep.subr.mxu1 %v2642_v4 }
 0x29f   : > { %2364 = vmatprep.mubr.msk.f32.mxu0 %vm2643_vm1, %v2642_v4 }
 0x2a0   : > { %2350 = vmatmul.mubr.msk.f32.vlgmr.msra.gmra.mxu1 %vm640_vm2, %v933_v51 }
 0x2a1   : > { %2358 = vmatpush3.xpose.msk.msra.mxu1 %vm640_vm2, %v952_v52  ;;  %2359 = vmatprep.mubr.msk.f32.mxu1 %vm2643_vm1, %v2642_v4 }
 0x2a2   : > { %2367 = vmatprep.subr.mxu1 %v2642_v4 }
 0x2a4   : > { %2360 = vmatmul.mubr.msk.f32.vlgmr.msra.gmra.mxu1 %vm640_vm2, %v935_v53 }
 0x2a5   : > { %2369 = vmatprep.mubr.msk.f32.mxu1 %vm2643_vm1, %v2642_v4 }
 0x35c   : > { %v2945_v55 = vpop.f32.mrf.mxu1 }
 0x35d   : > { %v2947_v56 = vpop.f32.mrf.mxu0  ;;  %v1265_v57 = vsel %vm640_vm2, %v2945_v55, -inf }
 0x35e   : > { %1266 = vmax.xlane.f32.xlu1 %v1265_v57  ;;  %v2346_v59 = vpop.f32.mrf.mxu1  ;;  %v1271_v1 = vsel %vm640_vm2, %v2947_v56, -inf }
 0x35f   : > { %v2356_v58 = vpop.f32.mrf.mxu0 }
 0x360   : > { %v2951_v60 = vpop.f32.mrf.mxu1 }
 0x361   : > { %v1268_v61 = vsel %vm640_vm2, %v2951_v60, -inf }
 0x362   : > { %1269 = vmax.xlane.f32.xlu0 %v1268_v61  ;;  %v2351_v62 = vpop.f32.mrf.mxu1 }
 0x364   : > { %v2955_v63 = vpop.f32.mrf.mxu1 }
 0x365   : > { %v1274_v2 = vsel %vm640_vm2, %v2955_v63, -inf }
 0x366   : > { %1272 = vmax.xlane.f32.xlu0 %v1271_v1  ;;  %1275 = vmax.xlane.f32.xlu1 %v1274_v2  ;;  %v2361_v3 = vpop.f32.mrf.mxu1 }
 0x377   : > { %647 = vrot.lane.b32.xlu1 %v2856_v17, %s2652_s20 }
 0x37b   : > { %649 = vrot.lane.b32.xlu1 %v2859_v18, %s2652_s20  ;;  %v2980_v18 = vld [vmem:[#allocation4 + $0x10] sm:$0xff] }
 0x37c   : > { %645 = vrot.lane.b32.xlu0 %v2842_v15, %s2652_s20 }
 0x380   : > { %651 = vrot.lane.b32.xlu0 %v2862_v19, %s2652_s20  ;;  %v2982_v19 = vld [vmem:[#allocation4 + $0x18] sm:$0xff]  ;;  %s2655_s20 = smov 24  }
 0x3e7   : > { %v1267_v7 = vpop.xlane.xlu1 %1266 }
 0x3e8   : > { %v2968_v8 = vmax.f32 %v2965_v6, %v1267_v7 }
 0x3ea   : > { %v1281_v10 = vsub.f32 %v2965_v6, %v2968_v8  ;;  %1681 = vst.msk [vmem:[#allocation4] sm:$0xff] %vm936_vm3, %v2968_v8  ;;  %1295 = vperm.xlu1 %2499, %v2968_v8  }
 0x3eb   : > { %v1270_v17 = vpop.xlane.xlu0 %1269 }
 0x3ec   : > { %v2978_v15 = vmax.f32 %v2970_v9, %v1270_v17 }
 0x3ee   : > { %v1282_v11 = vsub.f32 %v2970_v9, %v2978_v15  ;;  %1682 = vst.msk [vmem:[#allocation4 + $0x8] sm:$0xff] %vm936_vm3, %v2978_v15  ;;  %1300 = vperm.xlu0 %2500, %v2978_v15   ;;  %v1327_v9 = vld [vmem:[#allocation5 + $0x10] sm:$0xff] }
 0x3ef   : > { %v1273_v12 = vpop.xlane.xlu0 %1272  ;;  %v1276_v13 = vpop.xlane.xlu1 %1275 }
 0x3f0   : > { %v2990_v14 = vmax.f32 %v2980_v18, %v1273_v12  ;;  %v2993_v16 = vmax.f32 %v2982_v19, %v1276_v13 }
 0x3f2   : > { %v1283_v20 = vsub.f32 %v2980_v18, %v2990_v14  ;;  %1683 = vst.msk [vmem:[#allocation4 + $0x10] sm:$0xff] %vm936_vm3, %v2990_v14  ;;  %v1284_v21 = vsub.f32 %v2982_v19, %v2993_v16  ;;  %1684 = vst.msk [vmem:[#allocation4 + $0x18] sm:$0xff] %vm936_vm3, %v2993_v16  ;;  %1305 = vperm.xlu1 %2499, %v2990_v14   ;;  %v1287_v18 = vmul.f32 1.442695, %v1282_v11 }
 0x3f3   : > { %v646_v22 = vpop.permute.xlu0 %645  ;;  %v648_v23 = vpop.permute.xlu1 %647 }
 0x3f6   : > { %1310 = vperm.xlu1 %2499, %v2993_v16  }
 0x3f7   : > { %v652_v24 = vpop.permute.xlu0 %651  ;;  %v650_v25 = vpop.permute.xlu1 %649 }
 0x3f8   : > { %v673_v26 = vcombine.low %v648_v23, %v652_v24  ;;  %v674_v27 = vcombine.high %v648_v23, %v652_v24  ;;  %v657_v28 = vcombine.low %v646_v22, %v650_v25  ;;  %v658_v29 = vcombine.high %v646_v22, %v650_v25 }
 0x3fa   : > { %v681_v30 = vrot.slane %v673_v26, %v2869_v32  ;;  %v688_v31 = vrot.slane %v674_v27, %v2869_v32  ;;  %v665_v33 = vrot.slane %v657_v28, %v2869_v32  ;;  %v672_v34 = vrot.slane %v658_v29, %v2869_v32 }
 0x3fc   : > { %v689_v35 = vcombine.low %v665_v33, %v681_v30  ;;  %v690_v36 = vcombine.high %v665_v33, %v681_v30  ;;  %v705_v37 = vcombine.low %v672_v34, %v688_v31  ;;  %v706_v38 = vcombine.high %v672_v34, %v688_v31 }
 0x3fe   : > { %v697_v39 = vrot.slane %v689_v35, %v2879_v45  ;;  %v704_v40 = vrot.slane %v690_v36, %v2879_v45  ;;  %v713_v41 = vrot.slane %v705_v37, %v2879_v45  ;;  %v720_v42 = vrot.slane %v706_v38, %v2879_v45 }
 0x3ff   : > { %v1289_v37 = vmul.f32 1.442695, %v1283_v20 }
 0x400   : > { %v725_v43 = vcombine.low %v697_v39, %v704_v40  ;;  %v2262_v44 = vcombine.high %v697_v39, %v704_v40  ;;  %v741_v46 = vcombine.low %v713_v41, %v720_v42  ;;  %v2263_v47 = vcombine.high %v713_v41, %v720_v42  ;;  %v1326_v41 = vld [vmem:[#allocation5 + $0x8] sm:$0xff] }
 0x402   : > { %v732_v48 = vrot.slane %v725_v43, %v2869_v32  ;;  %v740_v49 = vrot.slane %v2262_v44, %v2869_v32  ;;  %v748_v50 = vrot.slane %v741_v46, %v2869_v32  ;;  %v756_v51 = vrot.slane %v2263_v47, %v2869_v32  ;;  %v1328_v47 = vld [vmem:[#allocation5 + $0x18] sm:$0xff] }
 0x404   : > { %v757_v52 = vcombine.low %v732_v48, %v740_v49  ;;  %v758_v53 = vcombine.high %v732_v48, %v740_v49  ;;  %v773_v54 = vcombine.low %v748_v50, %v756_v51  ;;  %v774_v57 = vcombine.high %v748_v50, %v756_v51 }
 0x406   : > { %v765_v58 = vrot.slane %v757_v52, %v2879_v45  ;;  %v772_v59 = vrot.slane %v758_v53, %v2879_v45  ;;  %v781_v61 = vrot.slane %v773_v54, %v2879_v45  ;;  %v788_v62 = vrot.slane %v774_v57, %v2879_v45 }
 0x408   : > { %v789_v1 = vcombine.low %v765_v58, %v781_v61  ;;  %v790_v2 = vcombine.high %v765_v58, %v781_v61  ;;  %v791_v3 = vcombine.low %v772_v59, %v788_v62  ;;  %v792_v5 = vcombine.high %v772_v59, %v788_v62 }
 0x40a   : > { %793 = vst.msk [vmem:[#allocation3] sm:$0xff] %vm640_vm2, %v789_v1  ;;  %794 = vst.msk [vmem:[#allocation3 + $0x8] sm:$0xff] %vm640_vm2, %v790_v2  ;;  %v1353_v1 = vld [vmem:[#allocation6] sm:$0xff] }
 0x40b   : > { %795 = vst.msk [vmem:[#allocation3 + $0x10] sm:$0xff] %vm640_vm2, %v791_v3  ;;  %796 = vst.msk [vmem:[#allocation3 + $0x18] sm:$0xff] %vm640_vm2, %v792_v5  ;;  %v1354_v5 = vld [vmem:[#allocation6 + $0x8] sm:$0xff] }
 0x411   : > { %v953_v7 = vld [vmem:[#allocation3] sm:$0xff]  ;;  %v954_v17 = vld [vmem:[#allocation3 + $0x8] sm:$0xff] }
 0x412   : > { %2363 = vmatpush3.msra.mxu0 %v953_v7  ;;  %2368 = vmatpush3.msra.mxu1 %v954_v17 }
 0x413   : > { %2372 = vmatprep.subr.mxu0 %v2642_v4  ;;  %2377 = vmatprep.subr.mxu1 %v2642_v4 }
 0x465   : > { %v1296_v12 = vpop.permute.xlu1 %1295 }
 0x466   : > { %v1313_v13 = vsub.f32 %v2945_v55, %v1296_v12  ;;  %v955_v55 = vld [vmem:[#allocation3 + $0x10] sm:$0xff] }
 0x468   : > { %v1317_v22 = vmul.f32 1.442695, %v1313_v13 }
 0x469   : > { %v1301_v23 = vpop.permute.xlu0 %1300 }
 0x46a   : > { %2503 = vpow2.f32 %v1317_v22  ;;  %v1314_v24 = vsub.f32 %v2951_v60, %v1301_v23  ;;  %v1285_v60 = vmul.f32 1.442695, %v1281_v10  ;;  %v1291_v10 = vmul.f32 1.442695, %v1284_v21  ;;  %v1325_v21 = vld [vmem:[#allocation5] sm:$0xff] }
 0x46c   : > { %v1319_v25 = vmul.f32 1.442695, %v1314_v24  ;;  %v1877_v24 = vld [vmem:[%s3219_s4 + $0x18] sm:$0xff] }
 0x46d   : > { %v1306_v26 = vpop.permute.xlu1 %1305 }
 0x46e   : > { %2505 = vpow2.f32 %v1319_v25  ;;  %v1315_v27 = vsub.f32 %v2947_v56, %v1306_v26  ;;  %v1355_v25 = vld [vmem:[#allocation6 + $0x10] sm:$0xff] }
 0x470   : > { %v1321_v28 = vmul.f32 1.442695, %v1315_v27 }
 0x471   : > { %v1311_v29 = vpop.permute.xlu1 %1310 }
 0x472   : > { %2507 = vpow2.f32 %v1321_v28  ;;  %v1316_v30 = vsub.f32 %v2955_v63, %v1311_v29  ;;  %v956_v63 = vld [vmem:[#allocation3 + $0x18] sm:$0xff] }
 0x474   : > { %v1323_v31 = vmul.f32 1.442695, %v1316_v30  ;;  %v1356_v30 = vld [vmem:[#allocation6 + $0x18] sm:$0xff] }
 0x476   : > { %2509 = vpow2.f32 %v1323_v31 }
 0x477   : > { %v2504_v33 = vpop.eup %2503  ;;  %2511 = vpow2.f32 %v1285_v60 }
 0x478   : > { %2365 = vmatmul.mubr.msk.f32.vlgmr.msra.gmra.mxu0 %vm640_vm2, %v2504_v33  ;;  %v1333_v34 = vsel %vm640_vm2, %v2504_v33, 0.0  ;;  %2513 = vpow2.f32 %v1289_v37 }
 0x479   : > { %2373 = vmatpush3.msra.mxu0 %v955_v55  ;;  %1334 = vadd.xlane.f32.xlu0 %v1333_v34  ;;  %2515 = vpow2.f32 %v1291_v10 }
 0x47a   : > { %2374 = vmatprep.mubr.msk.f32.mxu0 %vm2643_vm1, %v2642_v4  ;;  %2382 = vmatprep.subr.mxu0 %v2642_v4  ;;  %2517 = vpow2.f32 %v1287_v18 }
 0x47b   : > { %v2506_v56 = vpop.eup %2505 }
 0x47c   : > { %2370 = vmatmul.mubr.msk.f32.vlgmr.msra.gmra.mxu1 %vm640_vm2, %v2506_v56  ;;  %v1336_v35 = vsel %vm640_vm2, %v2506_v56, 0.0 }
 0x47d   : > { %2378 = vmatpush3.msra.mxu1 %v956_v63  ;;  %1337 = vadd.xlane.f32.xlu1 %v1336_v35 }
 0x47e   : > { %2379 = vmatprep.mubr.msk.f32.mxu1 %vm2643_vm1, %v2642_v4  ;;  %2393 = vmatprep.subr.mxu1 %v2642_v4 }
 0x47f   : > { %v2508_v36 = vpop.eup %2507 }
 0x480   : > { %2375 = vmatmul.mubr.msk.f32.vlgmr.msra.gmra.mxu0 %vm640_vm2, %v2508_v36  ;;  %v1339_v6 = vsel %vm640_vm2, %v2508_v36, 0.0 }
 0x481   : > { %1340 = vadd.xlane.f32.xlu0 %v1339_v6  ;;  %2390 = vmatprep.mubr.msk.f32.mxu0 %vm2643_vm1, %v2642_v4 }
 0x482   : > { %2383 = vmatpush3.msra.mxu0 %v1877_v24 }
 0x483   : > { %v2510_v8 = vpop.eup %2509  ;;  %2384 = vmatprep.subr.mxu0 %v2642_v4 }
 0x484   : > { %2380 = vmatmul.mubr.msk.f32.vlgmr.msra.gmra.mxu1 %vm640_vm2, %v2510_v8  ;;  %v1342_v38 = vsel %vm640_vm2, %v2510_v8, 0.0  ;;  %v2512_v14 = vpop.eup %2511 }
 0x485   : > { %1343 = vadd.xlane.f32.xlu0 %v1342_v38  ;;  %2401 = vmatprep.mubr.msk.f32.mxu1 %vm2643_vm1, %v2642_v4  ;;  %v2514_v20 = vpop.eup %2513  ;;  %v1329_v39 = vmul.f32 %v2512_v14, %v1325_v21 }
 0x486   : > { %v2516_v19 = vpop.eup %2515  ;;  %v1331_v11 = vmul.f32 %v2514_v20, %v1327_v9 }
 0x487   : > { %v2518_v16 = vpop.eup %2517  ;;  %v1332_v50 = vmul.f32 %v2516_v19, %v1328_v47 }
 0x488   : > { %v1330_v43 = vmul.f32 %v2518_v16, %v1326_v41 }
 0x48e   : > { %1359 = vperm.xlu1 %2499, %v2512_v14  }
 0x492   : > { %1369 = vperm.xlu1 %2499, %v2514_v20  }
 0x496   : > { %1374 = vperm.xlu1 %2499, %v2516_v19  }
 0x49b   : > { %1364 = vperm.xlu0 %2500, %v2518_v16  }
 0x502   : > { %v1335_v40 = vpop.xlane.xlu0 %1334 }
 0x503   : > { %v1345_v42 = vadd.f32 %v1335_v40, %v1329_v39 }
 0x505   : > { %1349 = vst.msk [vmem:[#allocation5] sm:$0xff] %vm936_vm3, %v1345_v42 }
 0x506   : > { %v1338_v44 = vpop.xlane.xlu1 %1337 }
 0x507   : > { %v1346_v15 = vadd.f32 %v1338_v44, %v1330_v43 }
 0x509   : > { %1350 = vst.msk [vmem:[#allocation5 + $0x8] sm:$0xff] %vm936_vm3, %v1346_v15 }
 0x50a   : > { %v1341_v46 = vpop.xlane.xlu0 %1340  ;;  %v1360_v2 = vpop.permute.xlu1 %1359 }
 0x50b   : > { %v1347_v48 = vadd.f32 %v1341_v46, %v1331_v11  ;;  %v1377_v3 = vmul.f32 %v1360_v2, %v1353_v1 }
 0x50c   : > { %v1685_v49 = vld [vmem:[#allocation5] sm:$0xff] }
 0x50d   : > { %1351 = vst.msk [vmem:[#allocation5 + $0x10] sm:$0xff] %vm936_vm3, %v1347_v48  ;;  %2519 = vrcp.f32 %v1685_v49  ;;  %v1876_v49 = vld [vmem:[%s3219_s4 + $0x10] sm:$0xff] }
 0x50e   : > { %v1344_v51 = vpop.xlane.xlu0 %1343  ;;  %v1370_v13 = vpop.permute.xlu1 %1369  ;;  %2385 = vmatpush3.msra.mxu0 %v1876_v49 }
 0x50f   : > { %v1348_v52 = vadd.f32 %v1344_v51, %v1332_v50  ;;  %v1379_v29 = vmul.f32 %v1370_v13, %v1355_v25  ;;  %v1875_v50 = vld [vmem:[%s3219_s4 + $0x8] sm:$0xff]  ;;  %2386 = vmatprep.subr.mxu0 %v2642_v4 }
 0x510   : > { %v1686_v53 = vld [vmem:[#allocation5 + $0x8] sm:$0xff]  ;;  %2387 = vmatpush3.msra.mxu0 %v1875_v50 }
 0x511   : > { %1352 = vst.msk [vmem:[#allocation5 + $0x18] sm:$0xff] %vm936_vm3, %v1348_v52  ;;  %2521 = vrcp.f32 %v1686_v53  ;;  %2388 = vmatprep.subr.mxu0 %v2642_v4 }
 0x512   : > { %v1375_v31 = vpop.permute.xlu1 %1374 }
 0x513   : > { %v1380_v56 = vmul.f32 %v1375_v31, %v1356_v30 }
 0x514   : > { %v1687_v54 = vld [vmem:[#allocation5 + $0x10] sm:$0xff] }
 0x515   : > { %2523 = vrcp.f32 %v1687_v54 }
 0x516   : > { %v1365_v7 = vpop.permute.xlu0 %1364 }
 0x517   : > { %v1378_v23 = vmul.f32 %v1365_v7, %v1354_v5 }
 0x518   : > { %v1688_v57 = vld [vmem:[#allocation5 + $0x18] sm:$0xff] }
 0x519   : > { %2525 = vrcp.f32 %v1688_v57 }
 0x51a   : > { %v2520_v58 = vpop.eup %2519 }
 0x51b   : > { %1699 = vperm.xlu0 %2500, %v2520_v58  }
 0x51e   : > { %v2522_v59 = vpop.eup %2521 }
 0x51f   : > { %1704 = vperm.xlu1 %2499, %v2522_v59  }
 0x522   : > { %v2524_v61 = vpop.eup %2523 }
 0x523   : > { %1709 = vperm.xlu0 %2500, %v2524_v61  }
 0x526   : > { %v2526_v62 = vpop.eup %2525 }
 0x527   : > { %1714 = vperm.xlu1 %2499, %v2526_v62   ;;  %v1874_v62 = vld [vmem:[%s3219_s4] sm:$0xff] }
 0x528   : > { %2389 = vmatpush3.msra.mxu0 %v1874_v62 }
 0x529   : > { %2404 = vmatprep.subr.mxu0 %v2642_v4 }
 0x538   : > { %v1450_v17 = vpop.f32.mrf.mxu0 }
 0x539   : > { %v1673_v12 = vadd.f32 %v1450_v17, %v1377_v3 }
 0x53a   : > { %v2366_v22 = vpop.f32.mrf.mxu0 }
 0x53b   : > { %1677 = vst.msk [vmem:[#allocation6] sm:$0xff] %vm640_vm2, %v1673_v12 }
 0x53c   : > { %v1523_v26 = vpop.f32.mrf.mxu1 }
 0x53d   : > { %v1674_v27 = vadd.f32 %v1523_v26, %v1378_v23 }
 0x53e   : > { %v2371_v28 = vpop.f32.mrf.mxu1 }
 0x53f   : > { %1678 = vst.msk [vmem:[#allocation6 + $0x8] sm:$0xff] %vm640_vm2, %v1674_v27 }
 0x540   : > { %v1596_v33 = vpop.f32.mrf.mxu0 }
 0x541   : > { %v1675_v55 = vadd.f32 %v1596_v33, %v1379_v29 }
 0x542   : > { %v2376_v34 = vpop.f32.mrf.mxu0  ;;  %v1693_v38 = vld [vmem:[#allocation6] sm:$0xff] }
 0x543   : > { %1679 = vst.msk [vmem:[#allocation6 + $0x10] sm:$0xff] %vm640_vm2, %v1675_v55 }
 0x544   : > { %v1669_v60 = vpop.f32.mrf.mxu1 }
 0x545   : > { %v1676_v63 = vadd.f32 %v1669_v60, %v1380_v56 }
 0x546   : > { %v2381_v35 = vpop.f32.mrf.mxu1  ;;  %v1694_v14 = vld [vmem:[#allocation6 + $0x8] sm:$0xff] }
 0x547   : > { %1680 = vst.msk [vmem:[#allocation6 + $0x18] sm:$0xff] %vm640_vm2, %v1676_v63 }
 0x54a   : > { %v1695_v8 = vld [vmem:[#allocation6 + $0x10] sm:$0xff] }
 0x54e   : > { %v1696_v19 = vld [vmem:[#allocation6 + $0x18] sm:$0xff] }
 0x596   : > { %v1700_v36 = vpop.permute.xlu0 %1699 }
 0x597   : > { %v1717_v18 = vmul.f32 %v1700_v36, %v1693_v38 }
 0x59a   : > { %v1705_v37 = vpop.permute.xlu1 %1704 }
 0x59b   : > { %v1718_v16 = vmul.f32 %v1705_v37, %v1694_v14 }
 0x59e   : > { %v1710_v6 = vpop.permute.xlu0 %1709 }
 0x59f   : > { %v1719_v10 = vmul.f32 %v1710_v6, %v1695_v8  ;;  %v1978_v6 = vld [vmem:[%s3221_s6 + $0x18] sm:$0xff]  ;;  %v1977_v8 = vld [vmem:[%s3221_s6 + $0x10] sm:$0xff] }
 0x5a0   : > { %2394 = vmatpush3.msra.mxu1 %v1978_v6 }
 0x5a1   : > { %v1721_v21 = vcombine.low %v1717_v18, %v1719_v10  ;;  %v1722_v39 = vcombine.high %v1717_v18, %v1719_v10  ;;  %2395 = vmatprep.subr.mxu1 %v2642_v4  ;;  %v1975_v10 = vld [vmem:[%s3221_s6] sm:$0xff] }
 0x5a2   : > { %v1715_v20 = vpop.permute.xlu1 %1714  ;;  %2396 = vmatpush3.msra.mxu1 %v1977_v8 }
 0x5a3   : > { %v1720_v40 = vmul.f32 %v1715_v20, %v1696_v19  ;;  %v1729_v43 = vrot.slane %v1721_v21, %v2869_v32  ;;  %v1736_v44 = vrot.slane %v1722_v39, %v2869_v32  ;;  %2397 = vmatprep.subr.mxu1 %v2642_v4  ;;  %v2282_v19 = vld [vmem:[%s3217_s2] ss:$0 sm:$0xff]  ;;  %v2071_v39 = vld [vmem:[%s3223_s8 + $0x38] sm:$0xff] }
 0x5a5   : > { %v1737_v41 = vcombine.low %v1718_v16, %v1720_v40  ;;  %v1738_v42 = vcombine.high %v1718_v16, %v1720_v40  ;;  %v2070_v40 = vld [vmem:[%s3223_s8 + $0x30] sm:$0xff] }
 0x5a7   : > { %v1745_v9 = vrot.slane %v1737_v41, %v2869_v32  ;;  %v1752_v15 = vrot.slane %v1738_v42, %v2869_v32  ;;  %v2069_v41 = vld [vmem:[%s3223_s8 + $0x28] sm:$0xff]  ;;  %v2068_v42 = vld [vmem:[%s3223_s8 + $0x20] sm:$0xff] }
 0x5a9   : > { %v1753_v11 = vcombine.low %v1729_v43, %v1745_v9  ;;  %v1754_v46 = vcombine.high %v1729_v43, %v1745_v9  ;;  %v1769_v47 = vcombine.low %v1736_v44, %v1752_v15  ;;  %v1770_v48 = vcombine.high %v1736_v44, %v1752_v15  ;;  %v2067_v43 = vld [vmem:[%s3223_s8 + $0x18] sm:$0xff]  ;;  %v2066_v44 = vld [vmem:[%s3223_s8 + $0x10] sm:$0xff]  ;;  %v2065_v9 = vld [vmem:[%s3223_s8 + $0x8] sm:$0xff] }
 0x5aa   : > { %v2064_v15 = vld [vmem:[%s3223_s8] sm:$0xff] }
 0x5ab   : > { %v1761_v51 = vrot.slane %v1753_v11, %v2879_v45  ;;  %v1768_v52 = vrot.slane %v1754_v46, %v2879_v45  ;;  %v1777_v53 = vrot.slane %v1769_v47, %v2879_v45  ;;  %v1784_v54 = vrot.slane %v1770_v48, %v2879_v45  ;;  %v2283_v11 = vld [vmem:[%s3222_s7] ss:$0 sm:$0xff] }
 0x5ad   : > { %v1789_v57 = vcombine.low %v1761_v51, %v1768_v52  ;;  %v2278_v58 = vcombine.high %v1761_v51, %v1768_v52  ;;  %v1805_v59 = vcombine.low %v1777_v53, %v1784_v54  ;;  %v2279_v61 = vcombine.high %v1777_v53, %v1784_v54 }
 0x5af   : > { %v1796_v1 = vrot.slane %v1789_v57, %v2869_v32  ;;  %v1804_v2 = vrot.slane %v2278_v58, %v2869_v32  ;;  %v1812_v3 = vrot.slane %v1805_v59, %v2869_v32  ;;  %v1820_v5 = vrot.slane %v2279_v61, %v2869_v32 }
 0x5b1   : > { %v1822_v7 = vcombine.high %v1796_v1, %v1804_v2  ;;  %v1838_v17 = vcombine.high %v1812_v3, %v1820_v5  ;;  %v1821_v12 = vcombine.low %v1796_v1, %v1804_v2  ;;  %v1837_v13 = vcombine.low %v1812_v3, %v1820_v5 }
 0x5b3   : > { %v1836_v22 = vrot.slane %v1822_v7, %v2879_v45  ;;  %v1852_v23 = vrot.slane %v1838_v17, %v2879_v45  ;;  %v1829_v24 = vrot.slane %v1821_v12, %v2879_v45  ;;  %v1845_v25 = vrot.slane %v1837_v13, %v2879_v45  ;;  %v2280_v45 = vld [vmem:[%s3220_s5] ss:$0 sm:$0xff] }
 0x5b5   : > { %v1855_v26 = vcombine.low %v1836_v22, %v1852_v23  ;;  %v1854_v27 = vcombine.high %v1829_v24, %v1845_v25  ;;  %v1853_v28 = vcombine.low %v1829_v24, %v1845_v25  ;;  %v1856_v32 = vcombine.high %v1836_v22, %v1852_v23 }
 0x5b7   : > { %1862 = vrot.lane.b32.xlu1 %v1855_v26, %s2653_s19  ;;  %1858 = vrot.lane.b32.xlu0 %v1854_v27, %s2654_s24 }
 0x5bb   : > { %1866 = vrot.lane.b32.xlu0 %v1856_v32, %s2655_s20  ;;  %s2288_s20 = sshll.u32 %s2631_s16, 7  ;;  %s2656_s16 = smov [#allocation10]  }
 0x5bc   : > { %s2168_s21 = scalar_lea.hbm %s3225_s10, %s2288_s20  ;;  %s2563_s27 = sshll.u32 %s2656_s16, 4  ;;  %s2564_s27 = int_to_ptr.vmem [resolvable:$false] %s2563_s27 }
 0x5bd   : > { %s2565_s13 = scalar_lea.vmem %s2564_s27, 256  ;;  %p2566_p0 = scmp.lt.s32.totalorder %s2171_s22, %s2564_s27 }
 0x5be   : > { %p2567_p1 = scmp.lt.s32.totalorder %s2565_s13, %s2559_s30 }
 0x5c0   : > { %p2568_p2 = por %p2567_p1, %p2566_p0 }
 0x5c2   : > { %p2569_p3 = pnand %p2568_p2, %p2562_p12 }
 0x629   : > { %v1859_v29 = vpop.permute.xlu0 %1858  ;;  %v1863_v30 = vpop.permute.xlu1 %1862 }
 0x62a   : > { %v1869_v31 = vsel %vm640_vm2, %v1853_v28, %v1859_v29 }
 0x62b   : > { %v1871_v55 = vsel %vm1870_vm4, %v1869_v31, %v1863_v30 }
 0x62d   : > { %v1867_v33 = vpop.permute.xlu0 %1866 }
 0x62e   : > { %v1873_v34 = vsel %vm1872_vm5, %v1871_v55, %v1867_v33 }
 0x62f   : > { %2391 = vmatmul.mubr.msk.f32.vlgmr.msra.gmra.mxu0 %vm392_vm0, %v1873_v34 }
 0x630   : > { %2420 = vmatprep.mubr.msk.f32.mxu0 %vm2643_vm1, %v2642_v4  ;;  %2405 = vmatpush3.msra.mxu0 %v2071_v39 }
 0x631   : > { %2406 = vmatprep.subr.mxu0 %v2642_v4 }
 0x632   : > { %2407 = vmatpush3.msra.mxu0 %v2070_v40 }
 0x633   : > { %2408 = vmatprep.subr.mxu0 %v2642_v4 }
 0x634   : > { %2409 = vmatpush3.msra.mxu0 %v2069_v41 }
 0x635   : > { %2410 = vmatprep.subr.mxu0 %v2642_v4 }
 0x636   : > { %2411 = vmatpush3.msra.mxu0 %v2068_v42 }
 0x637   : > { %2412 = vmatprep.subr.mxu0 %v2642_v4 }
 0x638   : > { %2413 = vmatpush3.msra.mxu0 %v2067_v43 }
 0x639   : > { %2414 = vmatprep.subr.mxu0 %v2642_v4 }
 0x63a   : > { %2415 = vmatpush3.msra.mxu0 %v2066_v44 }
 0x63b   : > { %2416 = vmatprep.subr.mxu0 %v2642_v4 }
 0x63c   : > { %2417 = vmatpush3.msra.mxu0 %v2065_v9 }
 0x63d   : > { %2418 = vmatprep.subr.mxu0 %v2642_v4 }
 0x63e   : > { %2419 = vmatpush3.msra.mxu0 %v2064_v15 }
 0x6ef   : > { %v1954_v56 = vpop.f32.mrf.mxu0 }
 0x6f0   : > { %v1955_v60 = vadd.f32 %v2280_v45, %v1954_v56 }
 0x6f1   : > { %v2392_v63 = vpop.f32.mrf.mxu0 }
 0x6f2   : > { %v3109_v35 = vadd.f32 %v1955_v60, %v2808_v0  ;;  %v1976_v0 = vld [vmem:[%s3221_s6 + $0x8] sm:$0xff] }
 0x6f3   : > { %2398 = vmatpush3.msra.mxu1 %v1976_v0 }
 0x6f4   : > { %v1960_v36 = vmul.f32 %v3109_v35, %v3109_v35  ;;  %2399 = vmatprep.subr.mxu1 %v2642_v4  ;;  %v2285_v4 = vld [vmem:[%s3224_s9] ss:$0 sm:$0xff] }
 0x6f5   : > { %2400 = vmatpush3.msra.mxu1 %v1975_v10 }
 0x6f6   : > { %v1961_v37 = vsel %vm392_vm0, %v1960_v36, 0.0 }
 0x6f7   : > { %1962 = vadd.xlane.f32.xlu1 %v1961_v37 }
 0x780   : > { %v1963_v38 = vpop.xlane.xlu1 %1962 }
 0x781   : > { %v1964_v18 = vmul.f32 0.03125, %v1963_v38 }
 0x783   : > { %v1965_v14 = vadd.f32 1.1920929e-07, %v1964_v18 }
 0x785   : > { %2527 = vrsqrt.f32 %v1965_v14 }
 0x792   : > { %v2528_v20 = vpop.eup %2527 }
 0x793   : > { %v1967_v16 = vmul.f32 %v2528_v20, %v3109_v35 }
 0x795   : > { %v1974_v21 = vmul.f32 %v2282_v19, %v1967_v16 }
 0x797   : > { %2402 = vmatmul.mubr.msk.f32.vlgmr.msra.gmra.mxu1 %vm392_vm0, %v1974_v21 }
 0x857   : > { %v2055_v46 = vpop.f32.mrf.mxu1 }
 0x858   : > { %v2056_v47 = vadd.f32 %v2283_v11, %v2055_v46 }
 0x859   : > { %v2403_v48 = vpop.f32.mrf.mxu1 }
 0x85a   : > { %v2060_v49 = vmul.f32 0.70710677, %v2056_v47  ;;  %v2059_v51 = vmul.f32 0.5, %v2056_v47 }
 0x85c   : > { %2529 = verf.f32 %v2060_v49 }
 0x869   : > { %v2530_v50 = vpop.eup %2529 }
 0x86a   : > { %v2062_v52 = vadd.f32 1.0, %v2530_v50 }
 0x86c   : > { %v2063_v53 = vmul.f32 %v2062_v52, %v2059_v51 }
 0x86e   : > { %2421 = vmatmul.mubr.msk.f32.vlgmr.msra.gmra.mxu0 %vm2079_vm6, %v2063_v53 }
 0x92e   : > { %v2149_v54 = vpop.f32.mrf.mxu0 }
 0x92f   : > { %v2150_v57 = vadd.f32 %v2285_v4, %v2149_v54 }
 0x930   : > { %v2422_v58 = vpop.f32.mrf.mxu0 }
 0x931   : > { %v2153_v59 = vadd.f32 %v2150_v57, %v3109_v35 }
 0x933   : > { %2154 = vst.msk [vmem:[%s388_s25] sm:$0xff] %vm392_vm0, %v2153_v59 }
 0x934   : > { %2572 = shalt.err (!%p2569_p3)
}
 0x935   : > { %s2573_s19 = scalar_lea.hbm %s2168_s21, 128  ;;  %s2577_s20 = scalar_lea.hbm %s3225_s10, 256 }
 0x936   : > { %p2574_p5 = scmp.ne.s32.totalorder %s2168_s21, %s2573_s19  ;;  %p2578_p10 = scmp.lt.s32.totalorder %s2168_s21, %s3225_s10 }
 0x937   : > { %p2579_p4 = scmp.lt.s32.totalorder %s2577_s20, %s2573_s19 }
 0x938   : > { %p2575_p6 = pnand %p2574_p5, %p2763_p9 }
 0x939   : > { %p2580_p13 = por %p2579_p4, %p2578_p10 }
 0x93a   : > { %p2576_p7 = pneg %p2575_p6 }
 0x93c   : > { %p2581_p8 = pnand %p2580_p13, %p2576_p7 }
 0x93e   : > { %2584 = shalt.err (!%p2581_p8)
}
 0x93f   : > { %2425 = dma.vmem_to_hbm [thread:$0]  (%p2763_p9), %s2171_s22, 128, %s2168_s21, %s2156_s29  }
 0x940 PF: > { %s3236_s11 = sld [smem:[#allocation13_spill]]  ;;  %p3237_p11 = scmp.ne.s32.totalorder %s3234_s28, 0 }
 0x941   : > { %p3238_p12 = scmp.ge.s32.totalorder %s2639_s18, 2 }
 0x943   : > { %p2432_p0 = pnand %p3238_p12, %p3237_p11 }
 0x945   : > { %p2433_p1 = pneg %p2432_p0 }
 0x946   : > { %s2182_s30 = sand.u32 1, %s3236_s11  }
 0x947   : > { %s2183_s16 = scalar_lea.sflag [#allocation9], %s2182_s30 }
 0x948   : > { %2614 = dma.done.wait (%p2433_p1), %s2183_s16, 128  }
 0x949   : > { %2616 = vsyncadd (%p2433_p1), %s2183_s16, 4294967168  ;;  %s26_s18 = sadd.s32 1, %s2639_s18   ;;  %s3239_s27 = sld [smem:[#allocation15_spill]] }
 0x94a   : > { %p23_p2 = scmp.ge.s32.totalorder %s26_s18, 4   ;;  %s3240_s26 = sld [smem:[#allocation14_spill]] }
 0x94b   : > { %s3241_s13 = smov %s2623_s14  ;;  %s3242_s14 = smov %s2627_s15 }
 0x94c   : > { %s3244_s16 = smov %s2635_s17  ;;  %25 = sbr.rel (!%p23_p2) target bundleno = 6 (0x6), region = 105 }
 0x94f   : > { %s3243_s15 = smov %s3239_s27 }
 0x950   : > { %s3245_s17 = smov %s3240_s26 }
 0x951   :  { %2188 = vsyncpa [#allocation8], 1 }
 0x952   :  { %2190 = vsyncpa [#allocation8 + $0x1], 1 }
 0x953   :  { %2191 = vsyncpa [#allocation9], 1 }
 0x954   :  { %2193 = vsyncpa [#allocation9 + $0x1], 1 }

</bundles_post_ra>
